<compile_context>
chip_gen: v7x
topology: tpu7x:2x2x1
jax: 0.10.0
libtpu: 0.0.40
codegen_flags: <defaults>
</compile_context>

<pallas_src>
import jax
import jax.numpy as jnp
from jax.experimental import pallas as pl
from jax.experimental.pallas import tpu as pltpu


def _make_kernel(L, Bt):
    """Kernel over one tile of Tm = Bt*L rows (Bt whole sequences)."""

    def kernel(x_ref, we_ref, be_ref,
               w1a, w1b, w1c, t1,
               w2a, w2b, w2c, t2,
               w3a, w3b, w3c, t3,
               x2_ref, x1_ref):
        Tm = x_ref.shape[0]

        # nn.Linear(in_channel, embedding_channel): bf16 operands, f32 accum.
        h = jnp.dot(x_ref[...].astype(jnp.bfloat16), we_ref[...],
                    preferred_element_type=jnp.float32) + be_ref[...]
        # TODO(synk): nn.Dropout(0.1) is identity in eval mode; not applied.

        # Per-sequence boundary masks, hoisted once and reused by all layers.
        row = jax.lax.broadcasted_iota(jnp.int32, (Tm, 1), 0) % L
        first_row = row == 0          # zero the h[t-1] tap at sequence starts
        last_row = row == (L - 1)     # zero the h[t+1] tap at sequence ends

        def conv3_bn(h, wa, wb, wc, t):
            # Conv1d(k=3, s=1, p=1) as three accumulating MXU dots against
            # pre-split weights (no lane-misaligned concat, no 3x-wide f32
            # temporary).  BN scale is folded into w; only the shift remains.
            h_prev = jnp.where(first_row, 0.0, pltpu.roll(h, shift=1, axis=0))
            h_next = jnp.where(last_row, 0.0,
                               pltpu.roll(h, shift=Tm - 1, axis=0))
            acc = jnp.dot(h_prev.astype(jnp.bfloat16), wa[...],
                          preferred_element_type=jnp.float32)
            acc = acc + jnp.dot(h.astype(jnp.bfloat16), wb[...],
                                preferred_element_type=jnp.float32)
            acc = acc + jnp.dot(h_next.astype(jnp.bfloat16), wc[...],
                                preferred_element_type=jnp.float32)
            return acc + t[...]

        y = conv3_bn(h, w1a, w1b, w1c, t1)
        y = jnp.where(y >= 0, y, 0.01 * y)            # LeakyReLU(0.01), f32
        y = conv3_bn(y, w2a, w2b, w2c, t2)
        y = jnp.where(y >= 0, y, 0.01 * y)
        y = conv3_bn(y, w3a, w3b, w3c, t3)            # (Tm, Cout) f32

        x2_ref[...] = y

        # Fused AdaptiveMaxPool1d(1): the tile holds whole sequences, so the
        # per-sequence max is final here (no cross-step accumulation needed).
        x1_ref[...] = jnp.max(y.reshape(Bt, L, -1), axis=1, keepdims=True)

    return kernel


def _choose_seqs_per_tile(B, L, Cin, E, C1, C2, Cout,
                          target_rows=1024, budget_bytes=20 * 2**20):
    """Largest divisor Bt of B with (Bt*L) rows within the VMEM activation
    budget (and sublane-aligned), capped once rows reach target_rows."""
    row_bytes = 4 * (Cin + E + C1 + C2 + 3 * Cout) + 2 * 3 * max(E, C1, C2)
    best = None
    for bt in range(1, B + 1):
        if B % bt:
            continue
        rows = bt * L
        if (rows % 8) and bt != B:     # keep (8,128) block constraint happy
            continue
        if best is not None and rows * row_bytes > budget_bytes:
            break
        best = bt
        if rows >= target_rows:
            break
    return best if best is not None else B


def _vmem_estimate(Tm, Cin, E, C1, C2, Cout):
    f32, bf16 = 4, 2
    act = Tm * (Cin + E + C1 + C2 + Cout) * f32            # x, h, y1, y2, y3
    taps = 3 * Tm * max(E, C1, C2) * bf16                  # bf16 conv taps
    io = 2 * Tm * Cin * f32 + 2 * Tm * Cout * f32          # double-buffered IO
    w = 2 * bf16 * (Cin * E + 3 * (E * C1 + C1 * C2 + C2 * Cout))
    return act + taps + io + w


def sequence_model_forward(x, params, *, seqs_per_tile=None):
    """Returns (x1, x2) matching Sequence_Model.forward in eval mode."""
    we, be, layers = params
    (w1a, w1b, w1c, t1), (w2a, w2b, w2c, t2), (w3a, w3b, w3c, t3) = layers
    B, L, Cin = x.shape
    E = we.shape[1]
    C1, C2, Cout = w1a.shape[1], w2a.shape[1], w3a.shape[1]

    if seqs_per_tile is None:
        seqs_per_tile = _choose_seqs_per_tile(B, L, Cin, E, C1, C2, Cout)
    Bt = seqs_per_tile
    assert B % Bt == 0
    Tm = Bt * L
    n_tiles = B // Bt
    M = B * L

    x2d = x.reshape(M, Cin)                     # free metadata reshape in JAX

    def full2(a):
        return pl.BlockSpec(a.shape, lambda b: (0, 0))

    in_specs = [pl.BlockSpec((Tm, Cin), lambda b: (b, 0))]
    for a in (we, be, w1a, w1b, w1c, t1, w2a, w2b, w2c, t2,
              w3a, w3b, w3c, t3):
        in_specs.append(full2(a))

    out_specs = (
        pl.BlockSpec((Tm, Cout), lambda b: (b, 0)),        # x2: (M, Cout)
        pl.BlockSpec((Bt, 1, Cout), lambda b: (b, 0, 0)),   # x1: (B, 1, Cout)
    )
    out_shape = (
        jax.ShapeDtypeStruct((M, Cout), jnp.float32),
        jax.ShapeDtypeStruct((B, 1, Cout), jnp.float32),
    )

    mm_terms = Cin * E + 3 * (E * C1 + C1 * C2 + C2 * Cout)
    cost = pl.CostEstimate(
        flops=2 * M * mm_terms,
        transcendentals=0,
        bytes_accessed=(4 * M * Cin + 4 * M * Cout + 4 * B * Cout
                        + 2 * mm_terms + 4 * (E + C1 + C2 + Cout)),
    )
    vmem_limit = int(min(max(2 * _vmem_estimate(Tm, Cin, E, C1, C2, Cout),
                             32 * 2**20), 48 * 2**20))

    x2_flat, x1_pad = pl.pallas_call(
        _make_kernel(L, Bt),
        grid=(n_tiles,),
        in_specs=in_specs,
        out_specs=out_specs,
        out_shape=out_shape,
        compiler_params=pltpu.CompilerParams(
            # TODO(synk): switch to pltpu.CORE_PARALLEL on the tile axis for
            # true 2-TC sharding on v7x once M per core >= 256; plain
            # "parallel"/"arbitrary" does not change codegen.
            dimension_semantics=("arbitrary",),
            vmem_limit_bytes=vmem_limit),
        cost_estimate=cost,
    )(x2d, we, be, w1a, w1b, w1c, t1, w2a, w2b, w2c, t2,
      w3a, w3b, w3c, t3)

    x2 = x2_flat.reshape(B, L, Cout)
    x1 = x1_pad.reshape(B, Cout)
    return x1, x2


def _bn_fold(gamma, beta, mean, var, eps=1e-5):
    s = gamma / jnp.sqrt(var + eps)
    t = beta - mean * s
    return s, t


def _make_params(key, in_channel, embedding_channel, med_channel, out_channel):
    """Random params in PyTorch layout, pre-folded/cast for the kernel:
    BN folded into conv weights + per-channel shift; conv weights pre-split
    into three (Cin, Cout) bf16 matrices (taps t-1, t, t+1)."""
    ks = iter(jax.random.split(key, 32))

    def conv_bn(cin, cout):
        w = 0.1 * jax.random.normal(next(ks), (3, cin, cout), jnp.float32)
        gamma = jax.random.uniform(next(ks), (cout,), jnp.float32, 0.5, 1.5)
        beta = 0.1 * jax.random.normal(next(ks), (cout,), jnp.float32)
        mean = 0.1 * jax.random.normal(next(ks), (cout,), jnp.float32)
        var = jax.random.uniform(next(ks), (cout,), jnp.float32, 0.5, 1.5)
        s, t = _bn_fold(gamma, beta, mean, var)
        wf = (w * s[None, None, :]).astype(jnp.bfloat16)     # (3, cin, cout)
        return wf[0], wf[1], wf[2], t[None, :]

    we = (0.1 * jax.random.normal(
        next(ks), (in_channel, embedding_channel), jnp.float32)
          ).astype(jnp.bfloat16)
    be = 0.1 * jax.random.normal(next(ks), (1, embedding_channel), jnp.float32)
    l1 = conv_bn(embedding_channel, med_channel[1])
    l2 = conv_bn(med_channel[1], med_channel[2])
    l3 = conv_bn(med_channel[2], out_channel)
    return we, be, (l1, l2, l3)


def reference(x, params):
    """Plain-JAX reference of Sequence_Model.forward (eval mode), using the
    same folded/bf16 parameters and bf16-operand / f32-accumulate dots so the
    comparison matches the kernel's MXU precision."""
    we, be, layers = params
    h = jnp.dot(x.astype(jnp.bfloat16), we,
                preferred_element_type=jnp.float32) + be          # (B, L, E)

    def conv_bn(h, wa, wb, wc, t):
        hp = jnp.pad(h, ((0, 0), (1, 1), (0, 0)))
        y = (jnp.dot(hp[:, :-2].astype(jnp.bfloat16), wa,
                     preferred_element_type=jnp.float32)
             + jnp.dot(hp[:, 1:-1].astype(jnp.bfloat16), wb,
                       preferred_element_type=jnp.float32)
             + jnp.dot(hp[:, 2:].astype(jnp.bfloat16), wc,
                       preferred_element_type=jnp.float32))
        return y + t

    y = conv_bn(h, *layers[0]); y = jnp.where(y >= 0, y, 0.01 * y)
    y = conv_bn(y, *layers[1]); y = jnp.where(y >= 0, y, 0.01 * y)
    y = conv_bn(y, *layers[2])
    return jnp.max(y, axis=1), y


if __name__ == "__main__":
    B, L = 2, 16
    in_channel = 8
    embedding_channel = 32
    med_channel = [32, 64, 128]
    out_channel = 256   # forced by x1.view(-1, 256) in the PyTorch module

    key = jax.random.PRNGKey(0)
    kx, kp = jax.random.split(key)
    x = jax.random.normal(kx, (B, L, in_channel), jnp.float32)
    params = _make_params(kp, in_channel, embedding_channel, med_channel,
                          out_channel)

    x1, x2 = sequence_model_forward(x, params)
    jax.block_until_ready((x1, x2))

    r1, r2 = reference(x, params)
    assert x1.shape == (B, out_channel) and x2.shape == (B, L, out_channel)
    assert jnp.allclose(x2, r2, atol=2e-3, rtol=2e-3)
    assert jnp.allclose(x1, r1, atol=2e-3, rtol=2e-3)
    print("KERNEL_OK")
</pallas_src>

<mosaic_0001>
module attributes {stable_mosaic.version = 11 : i64} {
  func.func @kernel(%arg0: i32, %arg1: memref<32x8xf32, #tpu.memory_space<vmem>>, %arg2: memref<8x32xbf16, #tpu.memory_space<vmem>>, %arg3: memref<1x32xf32, #tpu.memory_space<vmem>>, %arg4: memref<32x64xbf16, #tpu.memory_space<vmem>>, %arg5: memref<32x64xbf16, #tpu.memory_space<vmem>>, %arg6: memref<32x64xbf16, #tpu.memory_space<vmem>>, %arg7: memref<1x64xf32, #tpu.memory_space<vmem>>, %arg8: memref<64x128xbf16, #tpu.memory_space<vmem>>, %arg9: memref<64x128xbf16, #tpu.memory_space<vmem>>, %arg10: memref<64x128xbf16, #tpu.memory_space<vmem>>, %arg11: memref<1x128xf32, #tpu.memory_space<vmem>>, %arg12: memref<128x256xbf16, #tpu.memory_space<vmem>>, %arg13: memref<128x256xbf16, #tpu.memory_space<vmem>>, %arg14: memref<128x256xbf16, #tpu.memory_space<vmem>>, %arg15: memref<1x256xf32, #tpu.memory_space<vmem>>, %arg16: memref<32x256xf32, #tpu.memory_space<vmem>>, %arg17: memref<2x1x256xf32, #tpu.memory_space<vmem>>) attributes {dimension_semantics = [#tpu.dimension_semantics<arbitrary>], iteration_bounds = array<i64: 1>, scalar_prefetch = 0 : i64, scratch_operands = 0 : i64, tpu.core_type = #tpu.core_type<tc>, window_params = [{transform_indices = @transform_0, window_bounds = array<i64: 32, 8>}, {pipeline_mode = #tpu.pipeline_mode<synchronous>, transform_indices = @transform_1, window_bounds = array<i64: 8, 32>}, {pipeline_mode = #tpu.pipeline_mode<synchronous>, transform_indices = @transform_2, window_bounds = array<i64: 1, 32>}, {pipeline_mode = #tpu.pipeline_mode<synchronous>, transform_indices = @transform_3, window_bounds = array<i64: 32, 64>}, {pipeline_mode = #tpu.pipeline_mode<synchronous>, transform_indices = @transform_4, window_bounds = array<i64: 32, 64>}, {pipeline_mode = #tpu.pipeline_mode<synchronous>, transform_indices = @transform_5, window_bounds = array<i64: 32, 64>}, {pipeline_mode = #tpu.pipeline_mode<synchronous>, transform_indices = @transform_6, window_bounds = array<i64: 1, 64>}, {pipeline_mode = #tpu.pipeline_mode<synchronous>, transform_indices = @transform_7, window_bounds = array<i64: 64, 128>}, {pipeline_mode = #tpu.pipeline_mode<synchronous>, transform_indices = @transform_8, window_bounds = array<i64: 64, 128>}, {pipeline_mode = #tpu.pipeline_mode<synchronous>, transform_indices = @transform_9, window_bounds = array<i64: 64, 128>}, {pipeline_mode = #tpu.pipeline_mode<synchronous>, transform_indices = @transform_10, window_bounds = array<i64: 1, 128>}, {pipeline_mode = #tpu.pipeline_mode<synchronous>, transform_indices = @transform_11, window_bounds = array<i64: 128, 256>}, {pipeline_mode = #tpu.pipeline_mode<synchronous>, transform_indices = @transform_12, window_bounds = array<i64: 128, 256>}, {pipeline_mode = #tpu.pipeline_mode<synchronous>, transform_indices = @transform_13, window_bounds = array<i64: 128, 256>}, {pipeline_mode = #tpu.pipeline_mode<synchronous>, transform_indices = @transform_14, window_bounds = array<i64: 1, 256>}, {transform_indices = @transform_15, window_bounds = array<i64: 32, 256>}, {transform_indices = @transform_16, window_bounds = array<i64: 2, 1, 256>}]} {
    %c0 = arith.constant 0 : index
    %c0_0 = arith.constant 0 : index
    %0 = vector.load %arg1[%c0, %c0_0] : memref<32x8xf32, #tpu.memory_space<vmem>>, vector<32x8xf32>
    %1 = arith.truncf %0 : vector<32x8xf32> to vector<32x8xbf16>
    %c0_1 = arith.constant 0 : index
    %c0_2 = arith.constant 0 : index
    %2 = vector.load %arg2[%c0_1, %c0_2] : memref<8x32xbf16, #tpu.memory_space<vmem>>, vector<8x32xbf16>
    %cst = arith.constant dense<0.000000e+00> : vector<32x32xf32>
    %3 = tpu.matmul %1, %2, %cst {dimension_numbers = #tpu.dot_dimension_numbers<[1], [0], [0], [1], [0, 0, 1, 1], [], []>} : vector<32x8xbf16>, vector<8x32xbf16>, vector<32x32xf32> -> vector<32x32xf32>
    %c0_3 = arith.constant 0 : index
    %c0_4 = arith.constant 0 : index
    %4 = vector.load %arg3[%c0_3, %c0_4] : memref<1x32xf32, #tpu.memory_space<vmem>>, vector<1x32xf32>
    %5 = vector.broadcast %4 : vector<1x32xf32> to vector<32x32xf32>
    %6 = arith.addf %3, %5 : vector<32x32xf32>
    %7 = tpu.iota {dimensions = array<i32: 0>} : vector<32x1xi32>
    %c16_i32 = arith.constant 16 : i32
    %c0_i32 = arith.constant 0 : i32
    %8 = arith.cmpi eq, %c16_i32, %c0_i32 : i32
    %c1_i32 = arith.constant 1 : i32
    %9 = arith.select %8, %c1_i32, %c16_i32 : i32
    %10 = vector.broadcast %9 : i32 to vector<32x1xi32>
    %11 = arith.remsi %7, %10 : vector<32x1xi32>
    %c0_i32_5 = arith.constant 0 : i32
    %12 = vector.broadcast %c0_i32_5 : i32 to vector<32x1xi32>
    %13 = arith.cmpi ne, %11, %12 : vector<32x1xi32>
    %c0_i32_6 = arith.constant 0 : i32
    %14 = vector.broadcast %c0_i32_6 : i32 to vector<32x1xi32>
    %15 = arith.cmpi slt, %11, %14 : vector<32x1xi32>
    %c0_i32_7 = arith.constant 0 : i32
    %16 = arith.cmpi slt, %9, %c0_i32_7 : i32
    %17 = vector.broadcast %16 : i1 to vector<32x1xi1>
    %18 = vector.broadcast %17 : vector<32x1xi1> to vector<32x1xi1>
    %19 = arith.xori %15, %18 : vector<32x1xi1>
    %20 = arith.andi %19, %13 : vector<32x1xi1>
    %21 = vector.broadcast %9 : i32 to vector<32x1xi32>
    %22 = arith.addi %11, %21 : vector<32x1xi32>
    %23 = arith.select %20, %22, %11 : vector<32x1xi1>, vector<32x1xi32>
    %c0_i32_8 = arith.constant 0 : i32
    %24 = vector.broadcast %c0_i32_8 : i32 to vector<32x1xi32>
    %25 = arith.cmpi eq, %23, %24 : vector<32x1xi32>
    %c15_i32 = arith.constant 15 : i32
    %26 = vector.broadcast %c15_i32 : i32 to vector<32x1xi32>
    %27 = arith.cmpi eq, %23, %26 : vector<32x1xi32>
    %c1_i32_9 = arith.constant 1 : i32
    %28 = tpu.dynamic_rotate %6 by %c1_i32_9 dim 0 : vector<32x32xf32>, i32 -> vector<32x32xf32>
    %cst_10 = arith.constant 0.000000e+00 : f32
    %29 = vector.shape_cast %25 : vector<32x1xi1> to vector<32x1xi1>
    %30 = vector.broadcast %29 : vector<32x1xi1> to vector<32x32xi1>
    %31 = vector.broadcast %cst_10 : f32 to vector<32x32xf32>
    %32 = arith.select %30, %31, %28 : vector<32x32xi1>, vector<32x32xf32>
    %c31_i32 = arith.constant 31 : i32
    %33 = tpu.dynamic_rotate %6 by %c31_i32 dim 0 : vector<32x32xf32>, i32 -> vector<32x32xf32>
    %cst_11 = arith.constant 0.000000e+00 : f32
    %34 = vector.shape_cast %27 : vector<32x1xi1> to vector<32x1xi1>
    %35 = vector.broadcast %34 : vector<32x1xi1> to vector<32x32xi1>
    %36 = vector.broadcast %cst_11 : f32 to vector<32x32xf32>
    %37 = arith.select %35, %36, %33 : vector<32x32xi1>, vector<32x32xf32>
    %38 = arith.truncf %32 : vector<32x32xf32> to vector<32x32xbf16>
    %c0_12 = arith.constant 0 : index
    %c0_13 = arith.constant 0 : index
    %39 = vector.load %arg4[%c0_12, %c0_13] : memref<32x64xbf16, #tpu.memory_space<vmem>>, vector<32x64xbf16>
    %cst_14 = arith.constant dense<0.000000e+00> : vector<32x64xf32>
    %40 = tpu.matmul %38, %39, %cst_14 {dimension_numbers = #tpu.dot_dimension_numbers<[1], [0], [0], [1], [0, 0, 1, 1], [], []>} : vector<32x32xbf16>, vector<32x64xbf16>, vector<32x64xf32> -> vector<32x64xf32>
    %41 = arith.truncf %6 : vector<32x32xf32> to vector<32x32xbf16>
    %c0_15 = arith.constant 0 : index
    %c0_16 = arith.constant 0 : index
    %42 = vector.load %arg5[%c0_15, %c0_16] : memref<32x64xbf16, #tpu.memory_space<vmem>>, vector<32x64xbf16>
    %cst_17 = arith.constant dense<0.000000e+00> : vector<32x64xf32>
    %43 = tpu.matmul %41, %42, %cst_17 {dimension_numbers = #tpu.dot_dimension_numbers<[1], [0], [0], [1], [0, 0, 1, 1], [], []>} : vector<32x32xbf16>, vector<32x64xbf16>, vector<32x64xf32> -> vector<32x64xf32>
    %44 = arith.addf %40, %43 : vector<32x64xf32>
    %45 = arith.truncf %37 : vector<32x32xf32> to vector<32x32xbf16>
    %c0_18 = arith.constant 0 : index
    %c0_19 = arith.constant 0 : index
    %46 = vector.load %arg6[%c0_18, %c0_19] : memref<32x64xbf16, #tpu.memory_space<vmem>>, vector<32x64xbf16>
    %cst_20 = arith.constant dense<0.000000e+00> : vector<32x64xf32>
    %47 = tpu.matmul %45, %46, %cst_20 {dimension_numbers = #tpu.dot_dimension_numbers<[1], [0], [0], [1], [0, 0, 1, 1], [], []>} : vector<32x32xbf16>, vector<32x64xbf16>, vector<32x64xf32> -> vector<32x64xf32>
    %48 = arith.addf %44, %47 : vector<32x64xf32>
    %c0_21 = arith.constant 0 : index
    %c0_22 = arith.constant 0 : index
    %49 = vector.load %arg7[%c0_21, %c0_22] : memref<1x64xf32, #tpu.memory_space<vmem>>, vector<1x64xf32>
    %50 = vector.broadcast %49 : vector<1x64xf32> to vector<32x64xf32>
    %51 = arith.addf %48, %50 : vector<32x64xf32>
    %cst_23 = arith.constant 0.000000e+00 : f32
    %52 = vector.broadcast %cst_23 : f32 to vector<32x64xf32>
    %53 = arith.cmpf oge, %51, %52 : vector<32x64xf32>
    %cst_24 = arith.constant 0.00999999977 : f32
    %54 = vector.broadcast %cst_24 : f32 to vector<32x64xf32>
    %55 = arith.mulf %54, %51 : vector<32x64xf32>
    %56 = arith.select %53, %51, %55 : vector<32x64xi1>, vector<32x64xf32>
    %c1_i32_25 = arith.constant 1 : i32
    %57 = tpu.dynamic_rotate %56 by %c1_i32_25 dim 0 : vector<32x64xf32>, i32 -> vector<32x64xf32>
    %cst_26 = arith.constant 0.000000e+00 : f32
    %58 = vector.shape_cast %25 : vector<32x1xi1> to vector<32x1xi1>
    %59 = vector.broadcast %58 : vector<32x1xi1> to vector<32x64xi1>
    %60 = vector.broadcast %cst_26 : f32 to vector<32x64xf32>
    %61 = arith.select %59, %60, %57 : vector<32x64xi1>, vector<32x64xf32>
    %c31_i32_27 = arith.constant 31 : i32
    %62 = tpu.dynamic_rotate %56 by %c31_i32_27 dim 0 : vector<32x64xf32>, i32 -> vector<32x64xf32>
    %cst_28 = arith.constant 0.000000e+00 : f32
    %63 = vector.shape_cast %27 : vector<32x1xi1> to vector<32x1xi1>
    %64 = vector.broadcast %63 : vector<32x1xi1> to vector<32x64xi1>
    %65 = vector.broadcast %cst_28 : f32 to vector<32x64xf32>
    %66 = arith.select %64, %65, %62 : vector<32x64xi1>, vector<32x64xf32>
    %67 = arith.truncf %61 : vector<32x64xf32> to vector<32x64xbf16>
    %c0_29 = arith.constant 0 : index
    %c0_30 = arith.constant 0 : index
    %68 = vector.load %arg8[%c0_29, %c0_30] : memref<64x128xbf16, #tpu.memory_space<vmem>>, vector<64x128xbf16>
    %cst_31 = arith.constant dense<0.000000e+00> : vector<32x128xf32>
    %69 = tpu.matmul %67, %68, %cst_31 {dimension_numbers = #tpu.dot_dimension_numbers<[1], [0], [0], [1], [0, 0, 1, 1], [], []>} : vector<32x64xbf16>, vector<64x128xbf16>, vector<32x128xf32> -> vector<32x128xf32>
    %70 = arith.truncf %56 : vector<32x64xf32> to vector<32x64xbf16>
    %c0_32 = arith.constant 0 : index
    %c0_33 = arith.constant 0 : index
    %71 = vector.load %arg9[%c0_32, %c0_33] : memref<64x128xbf16, #tpu.memory_space<vmem>>, vector<64x128xbf16>
    %cst_34 = arith.constant dense<0.000000e+00> : vector<32x128xf32>
    %72 = tpu.matmul %70, %71, %cst_34 {dimension_numbers = #tpu.dot_dimension_numbers<[1], [0], [0], [1], [0, 0, 1, 1], [], []>} : vector<32x64xbf16>, vector<64x128xbf16>, vector<32x128xf32> -> vector<32x128xf32>
    %73 = arith.addf %69, %72 : vector<32x128xf32>
    %74 = arith.truncf %66 : vector<32x64xf32> to vector<32x64xbf16>
    %c0_35 = arith.constant 0 : index
    %c0_36 = arith.constant 0 : index
    %75 = vector.load %arg10[%c0_35, %c0_36] : memref<64x128xbf16, #tpu.memory_space<vmem>>, vector<64x128xbf16>
    %cst_37 = arith.constant dense<0.000000e+00> : vector<32x128xf32>
    %76 = tpu.matmul %74, %75, %cst_37 {dimension_numbers = #tpu.dot_dimension_numbers<[1], [0], [0], [1], [0, 0, 1, 1], [], []>} : vector<32x64xbf16>, vector<64x128xbf16>, vector<32x128xf32> -> vector<32x128xf32>
    %77 = arith.addf %73, %76 : vector<32x128xf32>
    %c0_38 = arith.constant 0 : index
    %c0_39 = arith.constant 0 : index
    %78 = vector.load %arg11[%c0_38, %c0_39] : memref<1x128xf32, #tpu.memory_space<vmem>>, vector<1x128xf32>
    %79 = vector.broadcast %78 : vector<1x128xf32> to vector<32x128xf32>
    %80 = arith.addf %77, %79 : vector<32x128xf32>
    %cst_40 = arith.constant 0.000000e+00 : f32
    %81 = vector.broadcast %cst_40 : f32 to vector<32x128xf32>
    %82 = arith.cmpf oge, %80, %81 : vector<32x128xf32>
    %cst_41 = arith.constant 0.00999999977 : f32
    %83 = vector.broadcast %cst_41 : f32 to vector<32x128xf32>
    %84 = arith.mulf %83, %80 : vector<32x128xf32>
    %85 = arith.select %82, %80, %84 : vector<32x128xi1>, vector<32x128xf32>
    %c1_i32_42 = arith.constant 1 : i32
    %86 = tpu.dynamic_rotate %85 by %c1_i32_42 dim 0 : vector<32x128xf32>, i32 -> vector<32x128xf32>
    %cst_43 = arith.constant 0.000000e+00 : f32
    %87 = vector.shape_cast %25 : vector<32x1xi1> to vector<32x1xi1>
    %88 = vector.broadcast %87 : vector<32x1xi1> to vector<32x128xi1>
    %89 = vector.broadcast %cst_43 : f32 to vector<32x128xf32>
    %90 = arith.select %88, %89, %86 : vector<32x128xi1>, vector<32x128xf32>
    %c31_i32_44 = arith.constant 31 : i32
    %91 = tpu.dynamic_rotate %85 by %c31_i32_44 dim 0 : vector<32x128xf32>, i32 -> vector<32x128xf32>
    %cst_45 = arith.constant 0.000000e+00 : f32
    %92 = vector.shape_cast %27 : vector<32x1xi1> to vector<32x1xi1>
    %93 = vector.broadcast %92 : vector<32x1xi1> to vector<32x128xi1>
    %94 = vector.broadcast %cst_45 : f32 to vector<32x128xf32>
    %95 = arith.select %93, %94, %91 : vector<32x128xi1>, vector<32x128xf32>
    %96 = arith.truncf %90 : vector<32x128xf32> to vector<32x128xbf16>
    %c0_46 = arith.constant 0 : index
    %c0_47 = arith.constant 0 : index
    %97 = vector.load %arg12[%c0_46, %c0_47] : memref<128x256xbf16, #tpu.memory_space<vmem>>, vector<128x256xbf16>
    %cst_48 = arith.constant dense<0.000000e+00> : vector<32x256xf32>
    %98 = tpu.matmul %96, %97, %cst_48 {dimension_numbers = #tpu.dot_dimension_numbers<[1], [0], [0], [1], [0, 0, 1, 1], [], []>} : vector<32x128xbf16>, vector<128x256xbf16>, vector<32x256xf32> -> vector<32x256xf32>
    %99 = arith.truncf %85 : vector<32x128xf32> to vector<32x128xbf16>
    %c0_49 = arith.constant 0 : index
    %c0_50 = arith.constant 0 : index
    %100 = vector.load %arg13[%c0_49, %c0_50] : memref<128x256xbf16, #tpu.memory_space<vmem>>, vector<128x256xbf16>
    %cst_51 = arith.constant dense<0.000000e+00> : vector<32x256xf32>
    %101 = tpu.matmul %99, %100, %cst_51 {dimension_numbers = #tpu.dot_dimension_numbers<[1], [0], [0], [1], [0, 0, 1, 1], [], []>} : vector<32x128xbf16>, vector<128x256xbf16>, vector<32x256xf32> -> vector<32x256xf32>
    %102 = arith.addf %98, %101 : vector<32x256xf32>
    %103 = arith.truncf %95 : vector<32x128xf32> to vector<32x128xbf16>
    %c0_52 = arith.constant 0 : index
    %c0_53 = arith.constant 0 : index
    %104 = vector.load %arg14[%c0_52, %c0_53] : memref<128x256xbf16, #tpu.memory_space<vmem>>, vector<128x256xbf16>
    %cst_54 = arith.constant dense<0.000000e+00> : vector<32x256xf32>
    %105 = tpu.matmul %103, %104, %cst_54 {dimension_numbers = #tpu.dot_dimension_numbers<[1], [0], [0], [1], [0, 0, 1, 1], [], []>} : vector<32x128xbf16>, vector<128x256xbf16>, vector<32x256xf32> -> vector<32x256xf32>
    %106 = arith.addf %102, %105 : vector<32x256xf32>
    %c0_55 = arith.constant 0 : index
    %c0_56 = arith.constant 0 : index
    %107 = vector.load %arg15[%c0_55, %c0_56] : memref<1x256xf32, #tpu.memory_space<vmem>>, vector<1x256xf32>
    %108 = vector.broadcast %107 : vector<1x256xf32> to vector<32x256xf32>
    %109 = arith.addf %106, %108 : vector<32x256xf32>
    %c0_57 = arith.constant 0 : index
    %c0_58 = arith.constant 0 : index
    %110 = vector.load %arg16[%c0_57, %c0_58] : memref<32x256xf32, #tpu.memory_space<vmem>>, vector<32x256xf32>
    tpu.vector_store %arg16[%c0_57, %c0_58], %109 {strides = array<i32>} : memref<32x256xf32, #tpu.memory_space<vmem>>, vector<32x256xf32>,
    %111 = vector.shape_cast %109 : vector<32x256xf32> to vector<2x16x256xf32>
    %cst_59 = arith.constant dense<0xFF800000> : vector<2x256xf32>
    %112 = vector.multi_reduction <maximumf>, %111, %cst_59 [1] : vector<2x16x256xf32> to vector<2x256xf32>
    %113 = vector.shape_cast %112 : vector<2x256xf32> to vector<2x1x256xf32>
    %c0_60 = arith.constant 0 : index
    %c0_61 = arith.constant 0 : index
    %c0_62 = arith.constant 0 : index
    %114 = vector.load %arg17[%c0_60, %c0_61, %c0_62] : memref<2x1x256xf32, #tpu.memory_space<vmem>>, vector<2x1x256xf32>
    tpu.vector_store %arg17[%c0_60, %c0_61, %c0_62], %113 {strides = array<i32>} : memref<2x1x256xf32, #tpu.memory_space<vmem>>, vector<2x1x256xf32>,
    return
  }
  func.func @transform_0(%arg0: i32) -> (i32, i32) {
    %c0_i32 = arith.constant 0 : i32
    %c0_i32_0 = arith.constant 0 : i32
    return %arg0, %c0_i32 : i32, i32
  }
  func.func @transform_1(%arg0: i32) -> (i32, i32) {
    %c0_i32 = arith.constant 0 : i32
    %c0_i32_0 = arith.constant 0 : i32
    %c0_i32_1 = arith.constant 0 : i32
    return %c0_i32, %c0_i32_0 : i32, i32
  }
  func.func @transform_2(%arg0: i32) -> (i32, i32) {
    %c0_i32 = arith.constant 0 : i32
    %c0_i32_0 = arith.constant 0 : i32
    %c0_i32_1 = arith.constant 0 : i32
    return %c0_i32, %c0_i32_0 : i32, i32
  }
  func.func @transform_3(%arg0: i32) -> (i32, i32) {
    %c0_i32 = arith.constant 0 : i32
    %c0_i32_0 = arith.constant 0 : i32
    %c0_i32_1 = arith.constant 0 : i32
    return %c0_i32, %c0_i32_0 : i32, i32
  }
  func.func @transform_4(%arg0: i32) -> (i32, i32) {
    %c0_i32 = arith.constant 0 : i32
    %c0_i32_0 = arith.constant 0 : i32
    %c0_i32_1 = arith.constant 0 : i32
    return %c0_i32, %c0_i32_0 : i32, i32
  }
  func.func @transform_5(%arg0: i32) -> (i32, i32) {
    %c0_i32 = arith.constant 0 : i32
    %c0_i32_0 = arith.constant 0 : i32
    %c0_i32_1 = arith.constant 0 : i32
    return %c0_i32, %c0_i32_0 : i32, i32
  }
  func.func @transform_6(%arg0: i32) -> (i32, i32) {
    %c0_i32 = arith.constant 0 : i32
    %c0_i32_0 = arith.constant 0 : i32
    %c0_i32_1 = arith.constant 0 : i32
    return %c0_i32, %c0_i32_0 : i32, i32
  }
  func.func @transform_7(%arg0: i32) -> (i32, i32) {
    %c0_i32 = arith.constant 0 : i32
    %c0_i32_0 = arith.constant 0 : i32
    %c0_i32_1 = arith.constant 0 : i32
    return %c0_i32, %c0_i32_0 : i32, i32
  }
  func.func @transform_8(%arg0: i32) -> (i32, i32) {
    %c0_i32 = arith.constant 0 : i32
    %c0_i32_0 = arith.constant 0 : i32
    %c0_i32_1 = arith.constant 0 : i32
    return %c0_i32, %c0_i32_0 : i32, i32
  }
  func.func @transform_9(%arg0: i32) -> (i32, i32) {
    %c0_i32 = arith.constant 0 : i32
    %c0_i32_0 = arith.constant 0 : i32
    %c0_i32_1 = arith.constant 0 : i32
    return %c0_i32, %c0_i32_0 : i32, i32
  }
  func.func @transform_10(%arg0: i32) -> (i32, i32) {
    %c0_i32 = arith.constant 0 : i32
    %c0_i32_0 = arith.constant 0 : i32
    %c0_i32_1 = arith.constant 0 : i32
    return %c0_i32, %c0_i32_0 : i32, i32
  }
  func.func @transform_11(%arg0: i32) -> (i32, i32) {
    %c0_i32 = arith.constant 0 : i32
    %c0_i32_0 = arith.constant 0 : i32
    %c0_i32_1 = arith.constant 0 : i32
    return %c0_i32, %c0_i32_0 : i32, i32
  }
  func.func @transform_12(%arg0: i32) -> (i32, i32) {
    %c0_i32 = arith.constant 0 : i32
    %c0_i32_0 = arith.constant 0 : i32
    %c0_i32_1 = arith.constant 0 : i32
    return %c0_i32, %c0_i32_0 : i32, i32
  }
  func.func @transform_13(%arg0: i32) -> (i32, i32) {
    %c0_i32 = arith.constant 0 : i32
    %c0_i32_0 = arith.constant 0 : i32
    %c0_i32_1 = arith.constant 0 : i32
    return %c0_i32, %c0_i32_0 : i32, i32
  }
  func.func @transform_14(%arg0: i32) -> (i32, i32) {
    %c0_i32 = arith.constant 0 : i32
    %c0_i32_0 = arith.constant 0 : i32
    %c0_i32_1 = arith.constant 0 : i32
    return %c0_i32, %c0_i32_0 : i32, i32
  }
  func.func @transform_15(%arg0: i32) -> (i32, i32) {
    %c0_i32 = arith.constant 0 : i32
    %c0_i32_0 = arith.constant 0 : i32
    return %arg0, %c0_i32 : i32, i32
  }
  func.func @transform_16(%arg0: i32) -> (i32, i32, i32) {
    %c0_i32 = arith.constant 0 : i32
    %c0_i32_0 = arith.constant 0 : i32
    %c0_i32_1 = arith.constant 0 : i32
    return %arg0, %c0_i32, %c0_i32_0 : i32, i32, i32
  }
}

</mosaic_0001>

<bundles_post_ra>
// kernel: tpu_custom_call.1
= control target key start
LH: loop header
LB: loop body
LE: loop exit
PB: predicated region body
PF: predicated region fallthrough
CT: control target
= control target key end

     0   :  { %s2636_s0 = inlined_call_operand.vmem [shape: f32[32,8], index: 0, kind: input, shape index: {}]   ;;  %s2637_s1 = inlined_call_operand.hbm [shape: bf16[8,32], index: 1, kind: input, shape index: {}]   ;;  %s2638_s2 = inlined_call_operand.hbm [shape: f32[1,32], index: 2, kind: input, shape index: {}]   ;;  %s2639_s3 = inlined_call_operand.hbm [shape: bf16[32,64], index: 3, kind: input, shape index: {}]   ;;  %s2640_s4 = inlined_call_operand.hbm [shape: bf16[32,64], index: 4, kind: input, shape index: {}]   ;;  %s2641_s5 = inlined_call_operand.hbm [shape: bf16[32,64], index: 5, kind: input, shape index: {}]   ;;  %s2642_s6 = inlined_call_operand.hbm [shape: f32[1,64], index: 6, kind: input, shape index: {}]   ;;  %s2643_s7 = inlined_call_operand.vmem [shape: bf16[64,128], index: 7, kind: input, shape index: {}]   ;;  %s2644_s8 = inlined_call_operand.vmem [shape: bf16[64,128], index: 8, kind: input, shape index: {}]   ;;  %s2645_s9 = inlined_call_operand.hbm [shape: bf16[64,128], index: 9, kind: input, shape index: {}]   ;;  %s2646_s10 = inlined_call_operand.vmem [shape: f32[1,128], index: 10, kind: input, shape index: {}]   ;;  %s2647_s11 = inlined_call_operand.hbm [shape: bf16[128,256], index: 11, kind: input, shape index: {}]   ;;  %s2648_s12 = inlined_call_operand.hbm [shape: bf16[128,256], index: 12, kind: input, shape index: {}]   ;;  %s2649_s13 = inlined_call_operand.hbm [shape: bf16[128,256], index: 13, kind: input, shape index: {}]   ;;  %s2650_s14 = inlined_call_operand.vmem [shape: f32[1,256], index: 14, kind: input, shape index: {}]   ;;  %s2651_s15 = inlined_call_operand.hbm [shape: f32[32,256], index: 15, kind: output, shape index: {0}]   ;;  %s2652_s16 = inlined_call_operand.hbm [shape: f32[2,1,256], index: 16, kind: output, shape index: {1}]  }
   0x1   :  { %2654 = sst [smem:[#allocation30_spill]] %s2636_s0 }
   0x2   :  { %22 = vsyncpa [#allocation3], 0 }
   0x3   :  { %23 = vsyncpa [#allocation6], 0 }
   0x4   :  { %24 = vsyncpa [#allocation9], 0 }
   0x5   :  { %25 = vsyncpa [#allocation12], 0 }
   0x6   :  { %26 = vsyncpa [#allocation15], 0 }
   0x7   :  { %27 = vsyncpa [#allocation18], 0 }
   0x8   :  { %28 = vsyncpa [#allocation4], 0 }
   0x9   :  { %29 = vsyncpa [#allocation21], 0  ;;  %s2173_s21 = smov [#allocation5]   ;;  %s1893_s25 = scalar_lea.hbm %s2638_s2, 16 }
   0xa   :  { %s48_s22 = sshll.u32 %s2173_s21, 4  ;;  %p1894_p0 = scmp.ne.s32.totalorder %s2638_s2, %s1893_s25  ;;  %s49_s22 = int_to_ptr.vmem [resolvable:$true] %s48_s22 }
   0xb   :  { %p1897_p1 = scmp.lt.u32.totalorder %s1893_s25, %s2638_s2 }
   0xd   :  { %p1899_p2 = pnand %p1897_p1, %p1894_p0 }
   0xf   :  { %1902 = shalt.err (!%p1899_p2)
}
  0x10   :  { %s1903_s30 = scalar_lea.vmem %s49_s22, 16  ;;  %s1907_s0 = scalar_lea.vmem %s49_s22, 32 }
  0x11   :  { %p1904_p3 = scmp.ne.s32.totalorder %s49_s22, %s1903_s30  ;;  %p1908_p4 = scmp.lt.s32.totalorder %s49_s22, %s49_s22 }
  0x12   :  { %p1909_p5 = scmp.lt.s32.totalorder %s1907_s0, %s1903_s30 }
  0x14   :  { %p1910_p6 = por %p1909_p5, %p1908_p4 }
  0x16   :  { %p1911_p7 = pnand %p1910_p6, %p1904_p3 }
  0x18   :  { %1914 = shalt.err (!%p1911_p7)
}
  0x19   :  { %51 = dma.hbm_to_vmem [thread:$0]  %s2638_s2, 16, %s49_s22, [#allocation6]  }
  0x1a   :  { %s2174_s19 = smov [#allocation8]   ;;  %s2175_s21 = smov [#allocation11]  }
  0x1b   :  { %s69_s20 = sshll.u32 %s2174_s19, 4  ;;  %s94_s23 = sshll.u32 %s2175_s21, 4  ;;  %s70_s20 = int_to_ptr.vmem [resolvable:$true] %s69_s20  ;;  %s95_s23 = int_to_ptr.vmem [resolvable:$true] %s94_s23 }
  0x1c   :  { %s1915_s26 = scalar_lea.hbm %s2640_s4, 256 }
  0x1d   :  { %p1916_p8 = scmp.ne.s32.totalorder %s2640_s4, %s1915_s26  ;;  %p1919_p9 = scmp.lt.u32.totalorder %s1915_s26, %s2640_s4 }
  0x1f   :  { %p1921_p10 = pnand %p1919_p9, %p1916_p8 }
  0x21   :  { %1924 = shalt.err (!%p1921_p10)
}
  0x22   :  { %s1925_s2 = scalar_lea.vmem %s70_s20, 256  ;;  %p1930_p12 = scmp.lt.s32.totalorder %s70_s20, %s70_s20 }
  0x23   :  { %p1926_p11 = scmp.ne.s32.totalorder %s70_s20, %s1925_s2  ;;  %p1931_p13 = scmp.lt.s32.totalorder %s1925_s2, %s1925_s2 }
  0x25   :  { %p1932_p0 = por %p1931_p13, %p1930_p12 }
  0x27   :  { %p1933_p1 = pnand %p1932_p0, %p1926_p11 }
  0x29   :  { %1936 = shalt.err (!%p1933_p1)
}
  0x2a   :  { %s2176_s22 = smov 64   ;;  %s2177_s0 = smov 4  }
  0x2b   :  { %75 = dma.hbm_to_vmem [thread:$0]  %s2640_s4, 256, %s70_s20, [#allocation9], %s2176_s22, %s2176_s22, %s2177_s0  }
  0x2c   :  { %s1937_s24 = scalar_lea.hbm %s2642_s6, 16 }
  0x2d   :  { %p1938_p2 = scmp.ne.s32.totalorder %s2642_s6, %s1937_s24  ;;  %p1941_p3 = scmp.lt.u32.totalorder %s1937_s24, %s2642_s6 }
  0x2f   :  { %p1943_p4 = pnand %p1941_p3, %p1938_p2 }
  0x31   :  { %1946 = shalt.err (!%p1943_p4)
}
  0x32   :  { %s1947_s29 = scalar_lea.vmem %s95_s23, 16  ;;  %s1951_s30 = scalar_lea.vmem %s95_s23, 32 }
  0x33   :  { %p1948_p5 = scmp.ne.s32.totalorder %s95_s23, %s1947_s29  ;;  %p1952_p6 = scmp.lt.s32.totalorder %s95_s23, %s95_s23 }
  0x34   :  { %p1953_p7 = scmp.lt.s32.totalorder %s1951_s30, %s1947_s29 }
  0x36   :  { %p1954_p8 = por %p1953_p7, %p1952_p6 }
  0x38   :  { %p1955_p9 = pnand %p1954_p8, %p1948_p5 }
  0x3a   :  { %1958 = shalt.err (!%p1955_p9)
}
  0x3b   :  { %97 = dma.hbm_to_vmem [thread:$0]  %s2642_s6, 16, %s95_s23, [#allocation12]  }
  0x3c   :  { %s2178_s2 = smov [#allocation14]   ;;  %s1959_s21 = scalar_lea.hbm %s2647_s11, 2048 }
  0x3d   :  { %s121_s17 = sshll.u32 %s2178_s2, 4  ;;  %p1960_p10 = scmp.ne.s32.totalorder %s2647_s11, %s1959_s21  ;;  %s122_s17 = int_to_ptr.vmem [resolvable:$true] %s121_s17 }
  0x3e   :  { %p1963_p11 = scmp.lt.u32.totalorder %s1959_s21, %s2647_s11 }
  0x40   :  { %p1965_p12 = pnand %p1963_p11, %p1960_p10 }
  0x42   :  { %1968 = shalt.err (!%p1965_p12)
}
  0x43   :  { %s1969_s28 = scalar_lea.vmem %s122_s17, 2048  ;;  %p1974_p0 = scmp.lt.s32.totalorder %s122_s17, %s122_s17 }
  0x44   :  { %p1970_p13 = scmp.ne.s32.totalorder %s122_s17, %s1969_s28  ;;  %p1975_p1 = scmp.lt.s32.totalorder %s1969_s28, %s1969_s28 }
  0x46   :  { %p1976_p2 = por %p1975_p1, %p1974_p0 }
  0x48   :  { %p1977_p3 = pnand %p1976_p2, %p1970_p13 }
  0x4a   :  { %1980 = shalt.err (!%p1977_p3)
}
  0x4b   :  { %s2179_s6 = smov 128   ;;  %s2180_s23 = smov 8  }
  0x4c   :  { %127 = dma.hbm_to_vmem [thread:$0]  %s2647_s11, 2048, %s122_s17, [#allocation15], %s2179_s6, %s2179_s6, %s2180_s23  }
  0x4d   :  { %s2181_s4 = smov [#allocation2]   ;;  %s2182_s2 = smov [#allocation7]  }
  0x4e   :  { %s38_s20 = sshll.u32 %s2181_s4, 4  ;;  %s57_s18 = sshll.u32 %s2182_s2, 4  ;;  %s39_s20 = int_to_ptr.vmem [resolvable:$true] %s38_s20  ;;  %s2335_s18 = int_to_ptr.vmem [resolvable:$true] %s57_s18 }
  0x4f   :  { %s1981_s24 = scalar_lea.hbm %s2637_s1, 64 }
  0x50   :  { %p1982_p4 = scmp.ne.s32.totalorder %s2637_s1, %s1981_s24  ;;  %p1985_p5 = scmp.lt.u32.totalorder %s1981_s24, %s2637_s1 }
  0x52   :  { %p1987_p6 = pnand %p1985_p5, %p1982_p4 }
  0x54   :  { %1990 = shalt.err (!%p1987_p6)
}
  0x55   :  { %s1991_s11 = scalar_lea.vmem %s39_s20, 64  ;;  %p1996_p8 = scmp.lt.s32.totalorder %s39_s20, %s39_s20 }
  0x56   :  { %p1992_p7 = scmp.ne.s32.totalorder %s39_s20, %s1991_s11  ;;  %p1997_p9 = scmp.lt.s32.totalorder %s1991_s11, %s1991_s11 }
  0x58   :  { %p1998_p10 = por %p1997_p9, %p1996_p8 }
  0x5a   :  { %p1999_p11 = pnand %p1998_p10, %p1992_p7 }
  0x5c   :  { %2002 = shalt.err (!%p1999_p11)
}
  0x5d   :  { %41 = dma.hbm_to_vmem [thread:$0]  %s2637_s1, 64, %s39_s20, [#allocation3]  }
  0x5e   :  { %s2003_s2 = scalar_lea.hbm %s2639_s3, 256 }
  0x5f   :  { %p2004_p12 = scmp.ne.s32.totalorder %s2639_s3, %s2003_s2  ;;  %p2007_p13 = scmp.lt.u32.totalorder %s2003_s2, %s2639_s3 }
  0x61   :  { %p2009_p0 = pnand %p2007_p13, %p2004_p12 }
  0x63   :  { %2012 = shalt.err (!%p2009_p0)
}
  0x64   :  { %s2013_s26 = scalar_lea.vmem %s2335_s18, 256  ;;  %p2018_p2 = scmp.lt.s32.totalorder %s2335_s18, %s2335_s18 }
  0x65   :  { %p2014_p1 = scmp.ne.s32.totalorder %s2335_s18, %s2013_s26  ;;  %p2019_p3 = scmp.lt.s32.totalorder %s2013_s26, %s2013_s26 }
  0x67   :  { %p2020_p4 = por %p2019_p3, %p2018_p2 }
  0x69   :  { %p2021_p5 = pnand %p2020_p4, %p2014_p1 }
  0x6b   :  { %2024 = shalt.err (!%p2021_p5)
}
  0x6c   :  { %63 = dma.hbm_to_vmem [thread:$0]  %s2639_s3, 256, %s2335_s18, [#allocation6], %s2176_s22, %s2176_s22, %s2177_s0  }
  0x6d   :  { %s2183_s27 = smov [#allocation10]   ;;  %s2184_s11 = smov [#allocation13]  }
  0x6e   :  { %s81_s28 = sshll.u32 %s2183_s27, 4  ;;  %s107_s17 = sshll.u32 %s2184_s11, 4  ;;  %s82_s28 = int_to_ptr.vmem [resolvable:$true] %s81_s28  ;;  %s2369_s17 = int_to_ptr.vmem [resolvable:$true] %s107_s17 }
  0x6f   :  { %s2025_s4 = scalar_lea.hbm %s2641_s5, 256 }
  0x70   :  { %p2026_p6 = scmp.ne.s32.totalorder %s2641_s5, %s2025_s4  ;;  %p2029_p7 = scmp.lt.u32.totalorder %s2025_s4, %s2641_s5 }
  0x72   :  { %p2031_p8 = pnand %p2029_p7, %p2026_p6 }
  0x74   :  { %2034 = shalt.err (!%p2031_p8)
}
  0x75   :  { %s2035_s3 = scalar_lea.vmem %s82_s28, 256  ;;  %p2040_p10 = scmp.lt.s32.totalorder %s82_s28, %s82_s28 }
  0x76   :  { %p2036_p9 = scmp.ne.s32.totalorder %s82_s28, %s2035_s3  ;;  %p2041_p11 = scmp.lt.s32.totalorder %s2035_s3, %s2035_s3 }
  0x78   :  { %p2042_p12 = por %p2041_p11, %p2040_p10 }
  0x7a   :  { %p2043_p13 = pnand %p2042_p12, %p2036_p9 }
  0x7c   :  { %2046 = shalt.err (!%p2043_p13)
}
  0x7d   :  { %87 = dma.hbm_to_vmem [thread:$0]  %s2641_s5, 256, %s82_s28, [#allocation9], %s2176_s22, %s2176_s22, %s2177_s0  }
  0x7e   :  { %s2047_s20 = scalar_lea.hbm %s2645_s9, 512 }
  0x7f   :  { %p2048_p0 = scmp.ne.s32.totalorder %s2645_s9, %s2047_s20  ;;  %p2051_p1 = scmp.lt.u32.totalorder %s2047_s20, %s2645_s9 }
  0x81   :  { %p2053_p2 = pnand %p2051_p1, %p2048_p0 }
  0x83   :  { %2056 = shalt.err (!%p2053_p2)
}
  0x84   :  { %s2057_s4 = scalar_lea.vmem %s2369_s17, 512  ;;  %p2062_p4 = scmp.lt.s32.totalorder %s2369_s17, %s2369_s17 }
  0x85   :  { %p2058_p3 = scmp.ne.s32.totalorder %s2369_s17, %s2057_s4  ;;  %p2063_p5 = scmp.lt.s32.totalorder %s2057_s4, %s2057_s4 }
  0x87   :  { %p2064_p6 = por %p2063_p5, %p2062_p4 }
  0x89   :  { %p2065_p7 = pnand %p2064_p6, %p2058_p3 }
  0x8b   :  { %2068 = shalt.err (!%p2065_p7)
}
  0x8c   :  { %113 = dma.hbm_to_vmem [thread:$0]  %s2645_s9, 512, %s2369_s17, [#allocation12], %s2176_s22, %s2176_s22, %s2177_s0  }
  0x8d   :  { %s2185_s2 = smov [#allocation16]   ;;  %s2186_s21 = smov [#allocation17]  }
  0x8e   :  { %s133_s19 = sshll.u32 %s2185_s2, 4  ;;  %s145_s24 = sshll.u32 %s2186_s21, 4  ;;  %s134_s19 = int_to_ptr.vmem [resolvable:$true] %s133_s19  ;;  %s2406_s24 = int_to_ptr.vmem [resolvable:$true] %s145_s24 }
  0x8f   :  { %s2069_s25 = scalar_lea.hbm %s2648_s12, 2048 }
  0x90   :  { %p2070_p8 = scmp.ne.s32.totalorder %s2648_s12, %s2069_s25  ;;  %p2073_p9 = scmp.lt.u32.totalorder %s2069_s25, %s2648_s12 }
  0x92   :  { %p2075_p10 = pnand %p2073_p9, %p2070_p8 }
  0x94   :  { %2078 = shalt.err (!%p2075_p10)
}
  0x95   :  { %s2079_s9 = scalar_lea.vmem %s134_s19, 2048  ;;  %p2084_p12 = scmp.lt.s32.totalorder %s134_s19, %s134_s19 }
  0x96   :  { %p2080_p11 = scmp.ne.s32.totalorder %s134_s19, %s2079_s9  ;;  %p2085_p13 = scmp.lt.s32.totalorder %s2079_s9, %s2079_s9 }
  0x98   :  { %p2086_p0 = por %p2085_p13, %p2084_p12 }
  0x9a   :  { %p2087_p1 = pnand %p2086_p0, %p2080_p11 }
  0x9c   :  { %2090 = shalt.err (!%p2087_p1)
}
  0x9d   :  { %139 = dma.hbm_to_vmem [thread:$0]  %s2648_s12, 2048, %s134_s19, [#allocation15], %s2179_s6, %s2179_s6, %s2180_s23  }
  0x9e   :  { %s2091_s29 = scalar_lea.hbm %s2649_s13, 2048 }
  0x9f   :  { %p2092_p2 = scmp.ne.s32.totalorder %s2649_s13, %s2091_s29  ;;  %p2095_p3 = scmp.lt.u32.totalorder %s2091_s29, %s2649_s13 }
  0xa1   :  { %p2097_p4 = pnand %p2095_p3, %p2092_p2 }
  0xa3   :  { %2100 = shalt.err (!%p2097_p4)
}
  0xa4   :  { %s2101_s2 = scalar_lea.vmem %s2406_s24, 2048  ;;  %p2106_p6 = scmp.lt.s32.totalorder %s2406_s24, %s2406_s24 }
  0xa5   :  { %p2102_p5 = scmp.ne.s32.totalorder %s2406_s24, %s2101_s2  ;;  %p2107_p7 = scmp.lt.s32.totalorder %s2101_s2, %s2101_s2 }
  0xa7   :  { %p2108_p8 = por %p2107_p7, %p2106_p6 }
  0xa9   :  { %p2109_p9 = pnand %p2108_p8, %p2102_p5 }
  0xab   :  { %2112 = shalt.err (!%p2109_p9)
}
  0xac   :  { %151 = dma.hbm_to_vmem [thread:$0]  %s2649_s13, 2048, %s2406_s24, [#allocation18], %s2179_s6, %s2179_s6, %s2180_s23  }
  0xad   :  { %2157 = dma.done.wait [#allocation3], 64  }
  0xae   :  { %2158 = vsyncadd [#allocation3], 4294967232 }
  0xaf   :  { %2159 = dma.done.wait [#allocation6], 272  }
  0xb0   :  { %2160 = vsyncadd [#allocation6], 4294967024 }
  0xb1   :  { %2161 = dma.done.wait [#allocation9], 512  }
  0xb2   :  { %2162 = vsyncadd [#allocation9], 4294966784 }
  0xb3   :  { %2163 = dma.done.wait [#allocation12], 528  }
  0xb4   :  { %2164 = vsyncadd [#allocation12], 4294966768 }
  0xb5   :  { %2165 = dma.done.wait [#allocation15], 4096  }
  0xb6   :  { %2166 = vsyncadd [#allocation15], 4294963200 }
  0xb7   :  { %2167 = dma.done.wait [#allocation18], 2048  }
  0xb8   :  { %2168 = vsyncadd [#allocation18], 4294965248  ;;  %vm206_vm0 = vcmask 1043456   ;;  %v191_v0 = vld [vmem:[#allocation2] sm:$0xf]  ;;  %s2655_s18 = sld [smem:[#allocation30_spill]]  ;;  %v259_v13 = vlaneseq }
  0xb9   :  { %vm199_vm1 = vcmask 64512   ;;  %1779 = vmatprep.subr.msk.bf16.mxu0 %vm206_vm0, %v191_v0  ;;  %v208_v3 = vsel %vm206_vm0, %v191_v0, 0  ;;  %v1803_v8 = vld [vmem:[#allocation8] sm:$0xff]   ;;  %v1804_v9 = vld [vmem:[#allocation8 + $0x8] sm:$0xff]   ;;  %v1805_v10 = vld [vmem:[#allocation7] sm:$0xff]   ;;  %vm386_vm6 = vcmask 261120  }
  0xba   :  { %1682 = vmatpush3.bf16.msra.mxu0 %v208_v3  ;;  %1687 = vmatprep.subr.bf16.mxu1 %v1803_v8  ;;  %v1809_v11 = vld [vmem:[%s2644_s8] sm:$0xff]   ;;  %v1810_v12 = vld [vmem:[%s2644_s8 + $0x8] sm:$0xff]   ;;  %v2462_v14 = vshrl.u32 %v259_v13, 7  ;;  %v1811_v0 = vld [vmem:[%s2644_s8 + $0x10] sm:$0xff]   ;;  %vm677_vm13 = vcmask 523264  }
  0xbb   :  { %1688 = vmatpush3.bf16.msra.mxu1 %v1803_v8  ;;  %1711 = vmatprep.subr.bf16.mxu0 %v1809_v11  ;;  %v1549_v17 = vld [vmem:[#allocation5] ss:$0 sm:$0xff]  ;;  %v1806_v49 = vld [vmem:[#allocation7 + $0x8] sm:$0xff]   ;;  %v1807_v61 = vld [vmem:[#allocation10] sm:$0xff]  }
  0xbc   :  { %1689 = vmatprep.subr.bf16.mxu1 %v1804_v9  ;;  %v263_v15 = vadd.s32 24, %v2462_v14  ;;  %v262_v16 = vadd.s32 16, %v2462_v14  ;;  %v261_v19 = vadd.s32 8, %v2462_v14  ;;  %v268_v21 = vand.u32 15, %v2462_v14  ;;  %v1808_v63 = vld [vmem:[#allocation10 + $0x8] sm:$0xff]  }
  0xbd   :  { %vm324_vm2 = vcmp.lt.s32.totalorder %v2462_v14, 1  ;;  %vm345_vm4 = vcmp.lt.s32.totalorder %v2462_v14, 7  ;;  %v1824_v3 = vld [vmem:[#allocation14] ss:$8 sps:$4 sm:$0xff]   ;;  %v1838_v8 = vld [vmem:[#allocation14 + $0x24] ss:$8 sps:$4 sm:$0xff]  }
  0xbe   :  { %v185_v1 = vld [vmem:[%s2655_s18] sm:$0xff]  ;;  %v186_v2 = vld [vmem:[%s2655_s18 + $0x8] sm:$0xff]  ;;  %v187_v5 = vld [vmem:[%s2655_s18 + $0x10] sm:$0xff]  ;;  %v289_v18 = vand.u32 15, %v263_v15  ;;  %v282_v20 = vand.u32 15, %v262_v16  ;;  %v275_v28 = vand.u32 15, %v261_v19 }
  0xbf   :  { %v189_v4 = vpack.c.bf16 %v186_v2, %v185_v1  ;;  %v188_v6 = vld [vmem:[%s2655_s18 + $0x18] sm:$0xff]  ;;  %1690 = vmatpush3.bf16.msra.mxu1 %v1804_v9  ;;  %vm2478_vm7 = vcmp.eq.s32.totalorder %v268_v21, 0  ;;  %v2525_v2 = vld [vmem:[%s2643_s7] sm:$0xff]   ;;  %v1842_v9 = vld [vmem:[#allocation14 + $0x30] ss:$8 sps:$4 sm:$0xff]   ;;  %v1421_v27 = vsub.s32 1, %v2462_v14 }
  0xc0   :  { %v190_v7 = vpack.c.bf16 %v188_v6, %v187_v5  ;;  %1695 = vmatprep.subr.bf16.mxu1 %v1805_v10  ;;  %vm2469_vm3 = vcmp.eq.s32.totalorder %v289_v18, 15  ;;  %vm2474_vm5 = vcmp.eq.s32.totalorder %v282_v20, 0  ;;  %vm2482_vm8 = vcmp.eq.s32.totalorder %v275_v28, 15  ;;  %v1812_v1 = vld [vmem:[%s2644_s8 + $0x18] sm:$0xff]   ;;  %v1830_v5 = vld [vmem:[#allocation14 + $0x10] ss:$8 sps:$4 sm:$0xff]  }
  0xc1   :  { %1683 = vmatprep.mubr.msk.bf16.mxu0 %vm199_vm1, %v189_v4  ;;  %v1826_v4 = vld [vmem:[#allocation14 + $0x4] ss:$8 sps:$4 sm:$0xff]   ;;  %v1832_v6 = vld [vmem:[#allocation14 + $0x14] ss:$8 sps:$4 sm:$0xff]   ;;  %v1884_v31 = vld [vmem:[#allocation17 + $0x50] ss:$8 sps:$4 sm:$0xff]  }
  0xc2   :  { %1684 = vmatmul.mubr.msk.bf16.vlgmr.msra.gmra.mrb[0].mxu0 %vm199_vm1, %v190_v7  ;;  %v1836_v7 = vld [vmem:[#allocation14 + $0x20] ss:$8 sps:$4 sm:$0xff]   ;;  %v1564_v15 = vld [vmem:[#allocation11] ss:$0 sm:$0xff] }
  0xc3   :  { %1712 = vmatpush3.bf16.msra.mxu0 %v1809_v11  ;;  %v1848_v11 = vld [vmem:[#allocation14 + $0x40] ss:$8 sps:$4 sm:$0xff]  }
  0xc4   :  { %1713 = vmatprep.subr.bf16.mxu0 %v1810_v12 }
  0xc7   :  { %1714 = vmatpush3.bf16.msra.mxu0 %v1810_v12  ;;  %v1850_v12 = vld [vmem:[#allocation14 + $0x44] ss:$8 sps:$4 sm:$0xff]  }
  0xc8   :  { %1715 = vmatprep.subr.bf16.mxu0 %v1811_v0 }
  0xcb   :  { %1716 = vmatpush3.bf16.msra.mxu0 %v1811_v0  ;;  %v1816_v0 = vld [vmem:[%s2643_s7 + $0x18] sm:$0xff]  }
  0xcc   :  { %1717 = vmatprep.subr.bf16.mxu0 %v1812_v1 }
  0xcf   :  { %1718 = vmatpush3.bf16.msra.mxu0 %v1812_v1  ;;  %v1817_v1 = vld [vmem:[#allocation13] sm:$0xff]  }
  0xd0   :  { %1723 = vmatprep.subr.bf16.mxu0 %v2525_v2 }
 0x195   :  { %v1685_v22 = vpop.f32.mrb[0].mxu0 }
 0x196   :  { %v253_v23 = vadd.f32 %v1685_v22, %v1549_v17  ;;  %v244_v24 = vpop.f32.mrb[1].mxu0 }
 0x197   :  { %v245_v25 = vadd.f32 %v1549_v17, %v244_v24  ;;  %v1686_v26 = vpop.f32.mrb[2].mxu0 }
 0x198   :  { %v256_v29 = vadd.f32 %v1686_v26, %v1549_v17  ;;  %v247_v30 = vpop.f32.mrb[3].mxu0  ;;  %v322_v33 = vrot.slane %v253_v23, 7  ;;  %v343_v37 = vrot.slane %v253_v23, 1 }
 0x199   :  { %v320_v34 = vrot.slane %v245_v25, 7  ;;  %v341_v35 = vrot.slane %v245_v25, 1  ;;  %v248_v36 = vadd.f32 %v1549_v17, %v247_v30 }
 0x19a   :  { %v323_v38 = vrot.slane %v256_v29, 7  ;;  %v344_v39 = vrot.slane %v256_v29, 1  ;;  %v369_v40 = vpack.c.bf16 %v256_v29, %v253_v23 }
 0x19b   :  { %v321_v41 = vrot.slane %v248_v36, 7  ;;  %v342_v42 = vrot.slane %v248_v36, 1  ;;  %v368_v43 = vpack.c.bf16 %v248_v36, %v245_v25 }
 0x19c   :  { %v325_v45 = vsel %vm324_vm2, %v322_v33, %v323_v38  ;;  %v346_v46 = vsel %vm345_vm4, %v343_v37, %v344_v39  ;;  %v349_v47 = vsel %vm345_vm4, %v344_v39, %v341_v35  ;;  %v328_v48 = vsel %vm324_vm2, %v323_v38, %v320_v34 }
 0x19d   :  { %v361_v50 = vsel %vm2469_vm3, 0.0, %v349_v47  ;;  %v326_v51 = vsel %vm324_vm2, %v321_v41, %v322_v33  ;;  %1691 = vmatprep.mubr.msk.bf16.mxu1 %vm386_vm6, %v368_v43  ;;  %v327_v52 = vsel %vm324_vm2, %v320_v34, %v321_v41  ;;  %v337_v53 = vsel %vm2478_vm7, 0.0, %v328_v48 }
 0x19e   :  { %v510_v54 = vpack.c.bf16 %v361_v50, %v346_v46  ;;  %v339_v55 = vsel %vm2474_vm5, 0.0, %v326_v51  ;;  %1692 = vmatmul.mubr.msk.bf16.vlgmr.msra.gmra.mrb[0].mxu1 %vm386_vm6, %v369_v40  ;;  %v362_v56 = vpack.c.bf16 %v327_v52, %v337_v53  ;;  %v347_v57 = vsel %vm345_vm4, %v342_v42, %v343_v37 }
 0x19f   :  { %v363_v58 = vpack.c.bf16 %v325_v45, %v339_v55  ;;  %1696 = vmatpush3.bf16.msra.mxu1 %v1805_v10  ;;  %v348_v59 = vsel %vm345_vm4, %v341_v35, %v342_v42  ;;  %v359_v60 = vsel %vm2482_vm8, 0.0, %v347_v57  ;;  %v1844_v10 = vld [vmem:[#allocation14 + $0x34] ss:$8 sps:$4 sm:$0xff]  }
 0x1a0   :  { %1699 = vmatprep.mubr.msk.bf16.mxu1 %vm386_vm6, %v362_v56  ;;  %1697 = vmatprep.subr.bf16.mxu1 %v1806_v49  ;;  %v509_v62 = vpack.c.bf16 %v359_v60, %v348_v59 }
 0x1a3   :  { %1698 = vmatpush3.bf16.msra.mxu1 %v1806_v49 }
 0x1a4   :  { %1703 = vmatprep.subr.bf16.mxu1 %v1807_v61 }
 0x1aa   :  { %1700 = vmatmul.mubr.msk.bf16.vlgmr.msra.gmra.mrb[0].mxu1 %vm386_vm6, %v363_v58 }
 0x1ab   :  { %1704 = vmatpush3.bf16.msra.mxu1 %v1807_v61  ;;  %1707 = vmatprep.mubr.msk.bf16.mxu1 %vm386_vm6, %v509_v62 }
 0x1ac   :  { %1705 = vmatprep.subr.bf16.mxu1 %v1808_v63 }
 0x1af   :  { %1706 = vmatpush3.bf16.msra.mxu1 %v1808_v63  ;;  %v1815_v63 = vld [vmem:[%s2643_s7 + $0x10] sm:$0xff]  }
 0x1b0   :  { %1201 = vmatprep.subr.bf16.mxu1 %v1826_v4  ;;  %v1820_v4 = vld [vmem:[#allocation13 + $0x18] sm:$0xff]  }
 0x1b6   :  { %1708 = vmatmul.mubr.msk.bf16.vlgmr.msra.gmra.mrb[0].mxu1 %vm386_vm6, %v510_v54  ;;  %v1814_v54 = vld [vmem:[%s2643_s7 + $0x8] sm:$0xff]   ;;  %vm1616_vm6 = vmneg %vm2478_vm7 }
 0x1b7   :  { %1202 = vmatpush1.bf16.msra.mxu1 %v1824_v3  ;;  %v1819_v3 = vld [vmem:[#allocation13 + $0x10] sm:$0xff]  }
 0x1b8   :  { %1203 = vmatprep.subr.bf16.mxu1 %v1832_v6  ;;  %v1821_v6 = vld [vmem:[#allocation16] ss:$8 sps:$4 sm:$0xff]  }
 0x1bb   :  { %1204 = vmatpush1.bf16.msra.mxu1 %v1830_v5  ;;  %v1823_v5 = vld [vmem:[#allocation16 + $0x4] ss:$8 sps:$4 sm:$0xff]  }
 0x1bc   :  { %1205 = vmatprep.subr.bf16.mxu1 %v1838_v8  ;;  %v1827_v8 = vld [vmem:[#allocation16 + $0x10] ss:$8 sps:$4 sm:$0xff]  }
 0x1bf   :  { %1206 = vmatpush1.bf16.msra.mxu1 %v1836_v7  ;;  %v1829_v7 = vld [vmem:[#allocation16 + $0x14] ss:$8 sps:$4 sm:$0xff]  }
 0x1c0   :  { %1207 = vmatprep.subr.bf16.mxu1 %v1844_v10  ;;  %v1833_v10 = vld [vmem:[#allocation16 + $0x20] ss:$8 sps:$4 sm:$0xff]  }
 0x1c3   :  { %1208 = vmatpush1.bf16.msra.mxu1 %v1842_v9  ;;  %v1835_v9 = vld [vmem:[#allocation16 + $0x24] ss:$8 sps:$4 sm:$0xff]  }
 0x1c4   :  { %1209 = vmatprep.subr.bf16.mxu1 %v1850_v12  ;;  %v1839_v12 = vld [vmem:[#allocation16 + $0x30] ss:$8 sps:$4 sm:$0xff]  }
 0x1c7   :  { %1210 = vmatpush1.bf16.msra.mxu1 %v1848_v11  ;;  %v1841_v11 = vld [vmem:[#allocation16 + $0x34] ss:$8 sps:$4 sm:$0xff]  }
 0x289   :  { %v1709_v16 = vpop.f32.mrb[0].mxu1 }
 0x28a   :  { %v595_v17 = vadd.f32 %v1709_v16, %v1564_v15  ;;  %v567_v18 = vpop.f32.mrb[1].mxu1  ;;  %v1845_v16 = vld [vmem:[#allocation16 + $0x40] ss:$8 sps:$4 sm:$0xff]  }
 0x28b   :  { %v593_v19 = vadd.f32 %v1564_v15, %v567_v18  ;;  %v1710_v20 = vpop.f32.mrb[2].mxu1  ;;  %v1851_v18 = vld [vmem:[#allocation16 + $0x50] ss:$8 sps:$4 sm:$0xff]  }
 0x28c   :  { %vm599_vm9 = vcmp.ge.f32.partialorder %v595_v17, 0.0  ;;  %v603_v21 = vmul.f32 0.01, %v595_v17  ;;  %v596_v22 = vadd.f32 %v1710_v20, %v1564_v15  ;;  %v570_v23 = vpop.f32.mrb[3].mxu1  ;;  %v1854_v20 = vld [vmem:[#allocation14 + $0x50] ss:$8 sps:$4 sm:$0xff]  }
 0x28d   :  { %vm597_vm10 = vcmp.ge.f32.partialorder %v593_v19, 0.0  ;;  %v601_v24 = vmul.f32 0.01, %v593_v19  ;;  %v594_v25 = vadd.f32 %v1564_v15, %v570_v23  ;;  %v1847_v15 = vld [vmem:[#allocation16 + $0x44] ss:$8 sps:$4 sm:$0xff]  }
 0x28e   :  { %v607_v26 = vsel %vm599_vm9, %v595_v17, %v603_v21  ;;  %vm600_vm11 = vcmp.ge.f32.partialorder %v596_v22, 0.0  ;;  %v604_v28 = vmul.f32 0.01, %v596_v22  ;;  %v1853_v17 = vld [vmem:[#allocation16 + $0x54] ss:$8 sps:$4 sm:$0xff]  }
 0x28f   :  { %v611_v29 = vrot.slane %v607_v26, 7  ;;  %v605_v30 = vsel %vm597_vm10, %v593_v19, %v601_v24  ;;  %vm598_vm12 = vcmp.ge.f32.partialorder %v594_v25, 0.0  ;;  %v602_v36 = vmul.f32 0.01, %v594_v25  ;;  %v1856_v19 = vld [vmem:[#allocation14 + $0x54] ss:$8 sps:$4 sm:$0xff]  }
 0x290   :  { %v609_v33 = vrot.slane %v605_v30, 7  ;;  %v621_v34 = vrot.slane %v605_v30, 1  ;;  %v608_v35 = vsel %vm600_vm11, %v596_v22, %v604_v28  ;;  %v623_v37 = vrot.slane %v607_v26, 1  ;;  %1211 = vmatprep.subr.bf16.mxu1 %v1856_v19  ;;  %v1859_v21 = vld [vmem:[#allocation16 + $0x64] ss:$8 sps:$4 sm:$0xff]   ;;  %vm1644_vm11 = vmneg %vm2469_vm3 }
 0x291   :  { %v612_v38 = vrot.slane %v608_v35, 7  ;;  %v624_v39 = vrot.slane %v608_v35, 1  ;;  %v644_v40 = vpack.c.bf16 %v608_v35, %v607_v26  ;;  %v606_v41 = vsel %vm598_vm12, %v594_v25, %v602_v36  ;;  %1212 = vmatpush1.bf16.msra.mxu1 %v1854_v20  ;;  %v1857_v22 = vld [vmem:[#allocation16 + $0x60] ss:$8 sps:$4 sm:$0xff]   ;;  %v1862_v23 = vld [vmem:[#allocation14 + $0x64] ss:$8 sps:$4 sm:$0xff]  }
 0x292   :  { %v610_v46 = vrot.slane %v606_v41, 7  ;;  %v622_v48 = vrot.slane %v606_v41, 1  ;;  %v643_v49 = vpack.c.bf16 %v606_v41, %v605_v30  ;;  %v1860_v24 = vld [vmem:[#allocation14 + $0x60] ss:$8 sps:$4 sm:$0xff]   ;;  %1213 = vmatprep.subr.bf16.mxu1 %v1862_v23  ;;  %v1865_v25 = vld [vmem:[#allocation16 + $0x74] ss:$8 sps:$4 sm:$0xff]  }
 0x293   :  { %v613_v42 = vsel %vm324_vm2, %v611_v29, %v612_v38  ;;  %v625_v43 = vsel %vm345_vm4, %v623_v37, %v624_v39  ;;  %v628_v45 = vsel %vm345_vm4, %v624_v39, %v621_v34  ;;  %v616_v50 = vsel %vm324_vm2, %v612_v38, %v609_v33  ;;  %v1863_v26 = vld [vmem:[#allocation16 + $0x70] ss:$8 sps:$4 sm:$0xff]   ;;  %v1868_v28 = vld [vmem:[#allocation14 + $0x74] ss:$8 sps:$4 sm:$0xff]   ;;  %v1881_v19 = vld [vmem:[#allocation17 + $0x40] ss:$8 sps:$4 sm:$0xff]  }
 0x294   :  { %v632_v47 = vsel %vm2469_vm3, 0.0, %v628_v45  ;;  %v614_v51 = vsel %vm324_vm2, %v610_v46, %v611_v29  ;;  %v615_v52 = vsel %vm324_vm2, %v609_v33, %v610_v46  ;;  %v617_v53 = vsel %vm2478_vm7, 0.0, %v616_v50  ;;  %1719 = vmatprep.mubr.msk.bf16.mxu0 %vm677_vm13, %v643_v49  ;;  %v1866_v29 = vld [vmem:[#allocation14 + $0x70] ss:$8 sps:$4 sm:$0xff]   ;;  %v1871_v33 = vld [vmem:[#allocation17 + $0x4] ss:$8 sps:$4 sm:$0xff]  }
 0x295   :  { %v813_v55 = vpack.c.bf16 %v632_v47, %v625_v43  ;;  %v619_v56 = vsel %vm2474_vm5, 0.0, %v614_v51  ;;  %v633_v57 = vpack.c.bf16 %v615_v52, %v617_v53  ;;  %v626_v58 = vsel %vm345_vm4, %v622_v48, %v623_v37  ;;  %1720 = vmatmul.mubr.msk.bf16.vlgmr.msra.gmra.mrb[4].mxu0 %vm677_vm13, %v644_v40  ;;  %1214 = vmatpush1.bf16.msra.mxu1 %v1860_v24  ;;  %v1886_v20 = vld [vmem:[#allocation17 + $0x54] ss:$8 sps:$4 sm:$0xff]   ;;  %v1890_v24 = vld [vmem:[#allocation17 + $0x70] ss:$8 sps:$4 sm:$0xff]  }
 0x296   :  { %v627_v59 = vsel %vm345_vm4, %v621_v34, %v622_v48  ;;  %v634_v60 = vpack.c.bf16 %v613_v42, %v619_v56  ;;  %v630_v61 = vsel %vm2482_vm8, 0.0, %v626_v58  ;;  %1724 = vmatpush3.bf16.msra.mxu0 %v2525_v2  ;;  %v1818_v2 = vld [vmem:[#allocation13 + $0x8] sm:$0xff]   ;;  %1215 = vmatprep.subr.bf16.mxu1 %v1868_v28  ;;  %v2187_v30 = vmov 0   ;;  %v1892_v23 = vld [vmem:[#allocation17 + $0x74] ss:$8 sps:$4 sm:$0xff]  }
 0x297   :  { %1731 = vmatprep.mubr.msk.bf16.mxu0 %vm677_vm13, %v633_v57  ;;  %v812_v62 = vpack.c.bf16 %v630_v61, %v627_v59  ;;  %1725 = vmatprep.subr.bf16.mxu0 %v1814_v54  ;;  %v1583_v34 = vld [vmem:[%s2646_s10] ss:$0 sm:$0xff]  ;;  %vm2188_vm7 = vmmov 1  }
 0x298   :  { %1233 = vmatprep.mubr.bf16.mxu1 %v2187_v30  ;;  %vm1617_vm9 = vmpackc.low %vm2188_vm7, %vm1616_vm6 }
 0x299   :  { %1216 = vmatpush1.bf16.msra.mxu1 %v1866_v29  ;;  %vm1645_vm12 = vmpackc.low %vm1644_vm11, %vm2188_vm7 }
 0x29a   :  { %1726 = vmatpush3.bf16.msra.mxu0 %v1814_v54  ;;  %1352 = vmatprep.subr.bf16.mxu1 %v1871_v33 }
 0x29b   :  { %1727 = vmatprep.subr.bf16.mxu0 %v1815_v63 }
 0x29e   :  { %1728 = vmatpush3.bf16.msra.mxu0 %v1815_v63 }
 0x29f   :  { %1729 = vmatprep.subr.bf16.mxu0 %v1816_v0 }
 0x2a2   :  { %1730 = vmatpush3.bf16.msra.mxu0 %v1816_v0 }
 0x2a3   :  { %1735 = vmatprep.subr.bf16.mxu0 %v1817_v1 }
 0x2a5   :  { %1732 = vmatmul.mubr.msk.bf16.vlgmr.msra.gmra.mrb[4].mxu0 %vm677_vm13, %v634_v60 }
 0x2a6   :  { %1736 = vmatpush3.bf16.msra.mxu0 %v1817_v1  ;;  %1743 = vmatprep.mubr.msk.bf16.mxu0 %vm677_vm13, %v812_v62 }
 0x2a7   :  { %1737 = vmatprep.subr.bf16.mxu0 %v1818_v2 }
 0x2aa   :  { %1738 = vmatpush3.bf16.msra.mxu0 %v1818_v2 }
 0x2ab   :  { %1739 = vmatprep.subr.bf16.mxu0 %v1819_v3 }
 0x2ae   :  { %1740 = vmatpush3.bf16.msra.mxu0 %v1819_v3 }
 0x2af   :  { %1741 = vmatprep.subr.bf16.mxu0 %v1820_v4 }
 0x2b2   :  { %1742 = vmatpush3.bf16.msra.mxu0 %v1820_v4  ;;  %v1869_v4 = vld [vmem:[#allocation17] ss:$8 sps:$4 sm:$0xff]  }
 0x2b3   :  { %1068 = vmatprep.subr.bf16.mxu0 %v1823_v5 }
 0x2b5   :  { %1744 = vmatmul.mubr.msk.bf16.vlgmr.msra.gmra.mrb[4].mxu0 %vm677_vm13, %v813_v55 }
 0x2b6   :  { %1069 = vmatpush1.bf16.msra.mxu0 %v1821_v6  ;;  %1100 = vmatprep.mubr.bf16.mxu0 %v2187_v30 }
 0x2b7   :  { %1070 = vmatprep.subr.bf16.mxu0 %v1829_v7 }
 0x2ba   :  { %1071 = vmatpush1.bf16.msra.mxu0 %v1827_v8  ;;  %v1874_v8 = vld [vmem:[#allocation17 + $0x14] ss:$8 sps:$4 sm:$0xff]  }
 0x2bb   :  { %1072 = vmatprep.subr.bf16.mxu0 %v1835_v9 }
 0x2be   :  { %1073 = vmatpush1.bf16.msra.mxu0 %v1833_v10 }
 0x2bf   :  { %1074 = vmatprep.subr.bf16.mxu0 %v1841_v11  ;;  %v1872_v11 = vld [vmem:[#allocation17 + $0x10] ss:$8 sps:$4 sm:$0xff]  }
 0x2c2   :  { %1075 = vmatpush1.bf16.msra.mxu0 %v1839_v12  ;;  %v1877_v12 = vld [vmem:[#allocation17 + $0x24] ss:$8 sps:$4 sm:$0xff]  }
 0x2c3   :  { %1076 = vmatprep.subr.bf16.mxu0 %v1847_v15  ;;  %v1875_v15 = vld [vmem:[#allocation17 + $0x20] ss:$8 sps:$4 sm:$0xff]  }
 0x2c6   :  { %1077 = vmatpush1.bf16.msra.mxu0 %v1845_v16  ;;  %v1880_v16 = vld [vmem:[#allocation17 + $0x34] ss:$8 sps:$4 sm:$0xff]  }
 0x2c7   :  { %1078 = vmatprep.subr.bf16.mxu0 %v1853_v17  ;;  %v1878_v17 = vld [vmem:[#allocation17 + $0x30] ss:$8 sps:$4 sm:$0xff]  }
 0x2ca   :  { %1079 = vmatpush1.bf16.msra.mxu0 %v1851_v18  ;;  %v1883_v18 = vld [vmem:[#allocation17 + $0x44] ss:$8 sps:$4 sm:$0xff]  }
 0x2cb   :  { %1080 = vmatprep.subr.bf16.mxu0 %v1859_v21  ;;  %v1889_v21 = vld [vmem:[#allocation17 + $0x64] ss:$8 sps:$4 sm:$0xff]  }
 0x2ce   :  { %1081 = vmatpush1.bf16.msra.mxu0 %v1857_v22  ;;  %v1887_v22 = vld [vmem:[#allocation17 + $0x60] ss:$8 sps:$4 sm:$0xff]  }
 0x2cf   :  { %1082 = vmatprep.subr.bf16.mxu0 %v1865_v25 }
 0x2d2   :  { %1083 = vmatpush1.bf16.msra.mxu0 %v1863_v26 }
 0x388   :  { %v1745_v35 = vpop.f32.mrb[4].mxu0 }
 0x389   :  { %v914_v36 = vadd.f32 %v1745_v35, %v1583_v34  ;;  %v886_v37 = vpop.f32.mrb[5].mxu0 }
 0x38a   :  { %v912_v38 = vadd.f32 %v1583_v34, %v886_v37  ;;  %v1746_v39 = vpop.f32.mrb[6].mxu0 }
 0x38b   :  { %vm918_vm14 = vcmp.ge.f32.partialorder %v914_v36, 0.0  ;;  %v922_v40 = vmul.f32 0.01, %v914_v36  ;;  %v915_v41 = vadd.f32 %v1746_v39, %v1583_v34  ;;  %v889_v42 = vpop.f32.mrb[7].mxu0 }
 0x38c   :  { %vm916_vm15 = vcmp.ge.f32.partialorder %v912_v38, 0.0  ;;  %v920_v43 = vmul.f32 0.01, %v912_v38  ;;  %v913_v45 = vadd.f32 %v1583_v34, %v889_v42 }
 0x38d   :  { %vm919_vm0 = vcmp.ge.f32.partialorder %v915_v41, 0.0  ;;  %v923_v46 = vmul.f32 0.01, %v915_v41  ;;  %v926_v47 = vsel %vm918_vm14, %v914_v36, %v922_v40  ;;  %v1417_v36 = vsub.s32 0, %v2462_v14 }
 0x38e   :  { %v924_v48 = vsel %vm916_vm15, %v912_v38, %v920_v43  ;;  %vm917_vm1 = vcmp.ge.f32.partialorder %v913_v45, 0.0  ;;  %v921_v52 = vmul.f32 0.01, %v913_v45  ;;  %v930_v56 = vrot.slane %v926_v47, 7 }
 0x38f   :  { %v928_v49 = vrot.slane %v924_v48, 7  ;;  %v940_v50 = vrot.slane %v924_v48, 1  ;;  %v927_v51 = vsel %vm919_vm0, %v915_v41, %v923_v46  ;;  %v942_v57 = vrot.slane %v926_v47, 1 }
 0x390   :  { %v931_v53 = vrot.slane %v927_v51, 7  ;;  %v943_v54 = vrot.slane %v927_v51, 1  ;;  %v971_v55 = vpack.c.bf16 %v927_v51, %v926_v47  ;;  %v925_v58 = vsel %vm917_vm1, %v913_v45, %v921_v52 }
 0x391   :  { %v929_v60 = vrot.slane %v925_v58, 7  ;;  %v941_v61 = vrot.slane %v925_v58, 1  ;;  %v970_v62 = vpack.c.bf16 %v925_v58, %v924_v48 }
 0x392   :  { %v935_v59 = vsel %vm324_vm2, %v931_v53, %v928_v49  ;;  %v932_v63 = vsel %vm324_vm2, %v930_v56, %v931_v53  ;;  %v944_v0 = vsel %vm345_vm4, %v942_v57, %v943_v54  ;;  %v947_v1 = vsel %vm345_vm4, %v943_v54, %v940_v50 }
 0x393   :  { %v934_v2 = vsel %vm324_vm2, %v928_v49, %v929_v60  ;;  %v945_v32 = vsel %vm345_vm4, %v941_v61, %v942_v57  ;;  %v946_v3 = vsel %vm345_vm4, %v940_v50, %v941_v61  ;;  %1101 = vmatmul.mubr.bf16.vlgmr.msra.gmra.mrb[8].mxu0 %v970_v62  ;;  %v933_v5 = vsel %vm324_vm2, %v929_v60, %v930_v56  ;;  %vm1620_vm4 = vmneg %vm2474_vm5 }
 0x394   :  { %v1642_v6 = vpack.c.bf16 %v945_v32, %v946_v3  ;;  %v1618_v7 = vpack.c.bf16 %v934_v2, %v935_v59  ;;  %1110 = vmatprep.mubr.bf16.mxu0 %v2187_v30  ;;  %v1622_v9 = vpack.c.bf16 %v932_v63, %v933_v5  ;;  %v1646_v10 = vpack.c.bf16 %v947_v1, %v944_v0  ;;  %vm1621_vm2 = vmpackc.low %vm2188_vm7, %vm1620_vm4 }
 0x395   :  { %vm1640_vm5 = vmneg %vm2482_vm8  ;;  %v2190_v2 = vmov 1966171168  }
 0x396   :  { %1619 = vmatmul.mubr.msk.bf16.vlgmr.msra.gmra.mrb[4].mxu1 %vm1617_vm9, %v1618_v7  ;;  %vm1641_vm10 = vmpackc.low %vm1640_vm5, %vm2188_vm7  ;;  %v1475_v32 = vunpack.c.l.s4 %v2190_v2 }
 0x397   :  { %1353 = vmatpush1.bf16.msra.mxu1 %v1869_v4  ;;  %1243 = vmatprep.mubr.bf16.mxu1 %v2187_v30 }
 0x398   :  { %1354 = vmatprep.subr.bf16.mxu1 %v1874_v8 }
 0x39b   :  { %1355 = vmatpush1.bf16.msra.mxu1 %v1872_v11  ;;  %1111 = vmatmul.mubr.bf16.gmra.mrb[12].mxu0 %v971_v55 }
 0x39c   :  { %1356 = vmatprep.subr.bf16.mxu1 %v1877_v12  ;;  %v1476_v12 = vunpack.c.0.s8 %v1475_v32 }
 0x39e   :  { %1623 = vmatmul.mubr.msk.bf16.gmra.mrb[8].mxu1 %vm1621_vm2, %v1622_v9 }
 0x39f   :  { %1357 = vmatpush1.bf16.msra.mxu1 %v1875_v15  ;;  %1384 = vmatprep.mubr.bf16.mxu1 %v2187_v30 }
 0x3a0   :  { %1358 = vmatprep.subr.bf16.mxu1 %v1880_v16 }
 0x3a3   :  { %1359 = vmatpush1.bf16.msra.mxu1 %v1878_v17 }
 0x3a4   :  { %1360 = vmatprep.subr.bf16.mxu1 %v1883_v18 }
 0x3a7   :  { %1361 = vmatpush1.bf16.msra.mxu1 %v1881_v19 }
 0x3a8   :  { %1362 = vmatprep.subr.bf16.mxu1 %v1886_v20 }
 0x3ab   :  { %1363 = vmatpush1.bf16.msra.mxu1 %v1884_v31 }
 0x3ac   :  { %1364 = vmatprep.subr.bf16.mxu1 %v1889_v21 }
 0x3af   :  { %1365 = vmatpush1.bf16.msra.mxu1 %v1887_v22 }
 0x3b0   :  { %1366 = vmatprep.subr.bf16.mxu1 %v1892_v23 }
 0x3b3   :  { %1367 = vmatpush1.bf16.msra.mxu1 %v1890_v24 }
 0x3b6   :  { %1643 = vmatmul.mubr.msk.bf16.vlgmr.msra.gmra.mrb[4].mxu1 %vm1641_vm10, %v1642_v6 }
 0x3b7   :  { %1394 = vmatprep.mubr.bf16.mxu1 %v2187_v30  ;;  %v1413_v30 = vld [vmem:[%s2650_s14] sm:$0x3]  ;;  %s2189_s14 = smov [#allocation19]  }
 0x3b8   :  { %v1418_v37 = vrot.slane %v1413_v30, %v1417_v36  ;;  %v1422_v39 = vrot.slane %v1413_v30, %v1421_v27  ;;  %s1516_s3 = sshll.u32 %s2189_s14, 4  ;;  %s1517_s3 = int_to_ptr.vmem [resolvable:$true] %s1516_s3 }
 0x3b9   :  { %s2113_s18 = scalar_lea.vmem %s1517_s3, 1024  ;;  %p2118_p11 = scmp.lt.s32.totalorder %s1517_s3, %s1517_s3 }
 0x3ba   :  { %p2114_p10 = scmp.ne.s32.totalorder %s1517_s3, %s2113_s18  ;;  %p2119_p12 = scmp.lt.s32.totalorder %s2113_s18, %s2113_s18 }
 0x3bc   :  { %p2120_p13 = por %p2119_p12, %p2118_p11 }
 0x3be   :  { %1647 = vmatmul.mubr.msk.bf16.gmra.mrb[8].mxu1 %vm1645_vm12, %v1646_v10  ;;  %p2121_p0 = pnand %p2120_p13, %p2114_p10 }
 0x466   :  { %v1102_v25 = vpop.f32.mrb[8].mxu0 }
 0x467   :  { %v1104_v26 = vpop.f32.mrb[9].mxu0 }
 0x468   :  { %v1106_v28 = vpop.f32.mrb[10].mxu0 }
 0x469   :  { %v1108_v29 = vpop.f32.mrb[11].mxu0 }
 0x46e   :  { %v1112_v33 = vpop.f32.mrb[12].mxu0 }
 0x46f   :  { %v1114_v34 = vpop.f32.mrb[13].mxu0 }
 0x470   :  { %v1116_v44 = vpop.f32.mrb[14].mxu0 }
 0x471   :  { %v1118_v35 = vpop.f32.mrb[15].mxu0 }
 0x489   :  { %v1386_v38 = vpop.f32.mrb[4].mxu1 }
 0x48a   :  { %v1747_v40 = vadd.f32 %v1386_v38, %v1102_v25  ;;  %v1388_v41 = vpop.f32.mrb[5].mxu1 }
 0x48b   :  { %v1748_v42 = vadd.f32 %v1388_v41, %v1104_v26  ;;  %v1390_v43 = vpop.f32.mrb[6].mxu1 }
 0x48c   :  { %v1425_v45 = vadd.f32 %v1747_v40, %v1418_v37  ;;  %v1749_v46 = vadd.f32 %v1390_v43, %v1106_v28  ;;  %v1392_v47 = vpop.f32.mrb[7].mxu1 }
 0x48d   :  { %v1426_v48 = vadd.f32 %v1748_v42, %v1422_v39  ;;  %v1750_v49 = vadd.f32 %v1392_v47, %v1108_v29 }
 0x48e   :  { %1433 = vst [vmem:[#allocation19] sm:$0xff] %v1425_v45  ;;  %v1427_v50 = vadd.f32 %v1749_v46, %v1418_v37 }
 0x48f   :  { %1434 = vst [vmem:[#allocation19 + $0x8] sm:$0xff] %v1426_v48  ;;  %v1428_v51 = vadd.f32 %v1750_v49, %v1422_v39 }
 0x490   :  { %1435 = vst [vmem:[#allocation19 + $0x10] sm:$0xff] %v1427_v50  ;;  %v1441_v52 = vmax.f32 %v1425_v45, %v1427_v50 }
 0x491   :  { %1436 = vst [vmem:[#allocation19 + $0x18] sm:$0xff] %v1428_v51  ;;  %v1448_v53 = vmax.f32 %v1426_v48, %v1428_v51  ;;  %v1396_v54 = vpop.f32.mrb[8].mxu1 }
 0x492   :  { %v1442_v55 = vrot.slane %v1441_v52, 4  ;;  %v1751_v56 = vadd.f32 %v1396_v54, %v1112_v33  ;;  %v1398_v57 = vpop.f32.mrb[9].mxu1 }
 0x493   :  { %v1449_v58 = vrot.slane %v1448_v53, 4  ;;  %v1752_v59 = vadd.f32 %v1398_v57, %v1114_v34  ;;  %v1400_v60 = vpop.f32.mrb[10].mxu1 }
 0x494   :  { %v1443_v61 = vmax.f32 %v1441_v52, %v1442_v55  ;;  %v1429_v62 = vadd.f32 %v1751_v56, %v1418_v37  ;;  %v1753_v63 = vadd.f32 %v1400_v60, %v1116_v44  ;;  %v1402_v0 = vpop.f32.mrb[11].mxu1 }
 0x495   :  { %v1450_v1 = vmax.f32 %v1448_v53, %v1449_v58  ;;  %v1430_v3 = vadd.f32 %v1752_v59, %v1422_v39  ;;  %v1754_v4 = vadd.f32 %v1402_v0, %v1118_v35 }
 0x496   :  { %v1444_v5 = vrot.slane %v1443_v61, 2  ;;  %1437 = vst [vmem:[#allocation19 + $0x20] sm:$0xff] %v1429_v62  ;;  %v1431_v6 = vadd.f32 %v1753_v63, %v1418_v37 }
 0x497   :  { %v1451_v7 = vrot.slane %v1450_v1, 2  ;;  %1438 = vst [vmem:[#allocation19 + $0x28] sm:$0xff] %v1430_v3  ;;  %v1432_v8 = vadd.f32 %v1754_v4, %v1422_v39 }
 0x498   :  { %v1445_v9 = vmax.f32 %v1443_v61, %v1444_v5  ;;  %1439 = vst [vmem:[#allocation19 + $0x30] sm:$0xff] %v1431_v6  ;;  %v1455_v10 = vmax.f32 %v1429_v62, %v1431_v6 }
 0x499   :  { %v1452_v11 = vmax.f32 %v1450_v1, %v1451_v7  ;;  %1440 = vst [vmem:[#allocation19 + $0x38] sm:$0xff] %v1432_v8  ;;  %v1462_v15 = vmax.f32 %v1430_v3, %v1432_v8 }
 0x49a   :  { %v1446_v16 = vrot.slane %v1445_v9, 1  ;;  %v1456_v17 = vrot.slane %v1455_v10, 4 }
 0x49b   :  { %2124 = shalt.err (!%p2121_p0)
}
 0x49c   :  { %s2125_s6 = scalar_lea.hbm %s2651_s15, 1024 }
 0x49d   :  { %p2126_p1 = scmp.ne.s32.totalorder %s2651_s15, %s2125_s6  ;;  %p2129_p2 = scmp.lt.u32.totalorder %s2125_s6, %s2651_s15 }
 0x49f   :  { %p2131_p3 = pnand %p2129_p2, %p2126_p1 }
 0x4a1   :  { %2134 = shalt.err (!%p2131_p3)
}
 0x4a2   :  { %s2191_s20 = smov 256   ;;  %s2192_s27 = smov 16   ;;  %v1453_v18 = vrot.slane %v1452_v11, 1  ;;  %v1463_v19 = vrot.slane %v1462_v15, 4  ;;  %v1447_v20 = vmax.f32 %v1445_v9, %v1446_v16  ;;  %v1457_v31 = vmax.f32 %v1455_v10, %v1456_v17 }
 0x4a3   :  { %1522 = dma.vmem_to_hbm [thread:$0]  %s1517_s3, 1024, %s2651_s15, [#allocation4], %s2191_s20, %s2191_s20, %s2192_s27   ;;  %v1479_v22 = vsub.s32 %v1476_v12, %v2462_v14  ;;  %vm1507_vm3 = vcmp.lt.s32.totalorder %v259_v13, 256 }
 0x4a4   :  { %v1454_v21 = vmax.f32 %v1452_v11, %v1453_v18  ;;  %v1464_v23 = vmax.f32 %v1462_v15, %v1463_v19  ;;  %v1458_v24 = vrot.slane %v1457_v31, 2  ;;  %s2193_s15 = smov [#allocation20]  }
 0x4a5   :  { %s1528_s0 = sshll.u32 %s2193_s15, 4  ;;  %s1529_s0 = int_to_ptr.vmem [resolvable:$true] %s1528_s0 }
 0x4a6   :  { %v1473_v25 = vcombine.low %v1447_v20, %v1454_v21  ;;  %v1465_v26 = vrot.slane %v1464_v23, 2  ;;  %v1459_v28 = vmax.f32 %v1457_v31, %v1458_v24  ;;  %s2135_s17 = scalar_lea.vmem %s1529_s0, 64  ;;  %p2140_p5 = scmp.lt.s32.totalorder %s1529_s0, %s1529_s0 }
 0x4a7   :  { %p2136_p4 = scmp.ne.s32.totalorder %s1529_s0, %s2135_s17  ;;  %p2141_p6 = scmp.lt.s32.totalorder %s2135_s17, %s2135_s17 }
 0x4a8   :  { %v1480_v29 = vrot.slane %v1473_v25, %v1479_v22  ;;  %v1466_v33 = vmax.f32 %v1464_v23, %v1465_v26  ;;  %v1460_v34 = vrot.slane %v1459_v28, 1 }
 0x4a9   :  { %p2142_p7 = por %p2141_p6, %p2140_p5 }
 0x4aa   :  { %v1467_v44 = vrot.slane %v1466_v33, 1  ;;  %v1487_v35 = vrot.slane %v1480_v29, %v1479_v22  ;;  %v1461_v36 = vmax.f32 %v1459_v28, %v1460_v34 }
 0x4ab   :  { %p2143_p8 = pnand %p2142_p7, %p2136_p4 }
 0x4ac   :  { %v1468_v30 = vmax.f32 %v1466_v33, %v1467_v44  ;;  %1509 = vst.msk [vmem:[#allocation20] sm:$0x3] %vm1507_vm3, %v1487_v35 }
 0x4ae   :  { %v1488_v27 = vcombine.low %v1461_v36, %v1468_v30 }
 0x4b0   :  { %v1495_v37 = vrot.slane %v1488_v27, %v1479_v22 }
 0x4b2   :  { %v1502_v14 = vrot.slane %v1495_v37, %v1479_v22 }
 0x4b4   :  { %1510 = vst.msk [vmem:[#allocation20 + $0x2] sm:$0x3] %vm1507_vm3, %v1502_v14 }
 0x4b5   :  { %2146 = shalt.err (!%p2143_p8)
}
 0x4b6   :  { %s2147_s30 = scalar_lea.hbm %s2652_s16, 64 }
 0x4b7   :  { %p2148_p9 = scmp.ne.s32.totalorder %s2652_s16, %s2147_s30  ;;  %p2151_p10 = scmp.lt.u32.totalorder %s2147_s30, %s2652_s16 }
 0x4b9   :  { %p2153_p11 = pnand %p2151_p10, %p2148_p9 }
 0x4bb   :  { %2156 = shalt.err (!%p2153_p11)
}
 0x4bc   :  { %s2194_s2 = smov 32   ;;  %s2195_s12 = smov 2  }
 0x4bd   :  { %1534 = dma.vmem_to_hbm [thread:$0]  %s1529_s0, 64, %s2652_s16, [#allocation21], %s2194_s2, %s2194_s2, %s2195_s12  }
 0x4be   :  { %2169 = dma.done.wait [#allocation4], 1024  }
 0x4bf   :  { %2170 = vsyncadd [#allocation4], 4294966272 }
 0x4c0   :  { %2171 = dma.done.wait [#allocation21], 64  }
 0x4c1   :  { %2172 = vsyncadd [#allocation21], 4294967232 }
 0x4c2   :  { %1541 = vsyncpa [#allocation3], 1 }
 0x4c3   :  { %1542 = vsyncpa [#allocation6], 1 }
 0x4c4   :  { %1543 = vsyncpa [#allocation9], 1 }
 0x4c5   :  { %1544 = vsyncpa [#allocation12], 1 }
 0x4c6   :  { %1545 = vsyncpa [#allocation15], 1 }
 0x4c7   :  { %1546 = vsyncpa [#allocation18], 1 }
 0x4c8   :  { %1547 = vsyncpa [#allocation4], 1 }
 0x4c9   :  { %1548 = vsyncpa [#allocation21], 1 }

</bundles_post_ra>
